<compile_context>
chip_gen: v7x
topology: tpu7x:2x2x1
jax: 0.10.0
libtpu: 0.0.40
codegen_flags: <defaults>
</compile_context>

<pallas_src>
import jax
import jax.numpy as jnp
from jax import lax
from jax.experimental import pallas as pl
from jax.experimental.pallas import tpu as pltpu

NEG = -1e9   # additive-mask value for padded softmax lanes
TB = 8       # time-block size: sublane-dense (8, lanes) output stores


def _round_up(x, m):
    return ((x + m - 1) // m) * m


# -------------------- recurrent kernel: attention + GRU ----------------------
def gru_attn_recurrent_kernel(
    # inputs
    e_proj_ref,   # (TB, Lp + H)  pipelined per time-block: emb @ [attn_e | combine_e]
    h0_ref,       # (1, H)
    enc_ref,      # (Lp, H)       zero-padded encoder outputs
    w_hid_ref,    # (H, Lp + 3H)  [attn_h | W_hh^T]  (VMEM-resident, constant index map)
    attn_b_ref,   # (1, Lp)       padded with NEG
    comb_wa_ref,  # (H, H)
    comb_b_ref,   # (1, H)
    w_ih_ref,     # (H, 3H)       GRU input weights, gate order [r, z, n]
    b_ih_ref,     # (1, 3H)
    b_hh_ref,     # (1, 3H)
    # outputs (one (TB, ...) block per grid step)
    hseq_ref,     # (TB, H)
    aw_ref,       # (TB, Lp)
    # scratch
    h_scr,        # VMEM (1, H)   hidden carried across grid steps
):
    H = h0_ref.shape[1]
    Lp = attn_b_ref.shape[1]
    Tb = e_proj_ref.shape[0]

    @pl.when(pl.program_id(0) == 0)
    def _():
        h_scr[...] = h0_ref[...]

    def step(t, h):
        # Token-only projection was precomputed outside (batched over T).
        e_row = e_proj_ref[pl.ds(t, 1), :]                                  # (1, Lp+H)
        h_proj = jnp.dot(h, w_hid_ref[...],
                         preferred_element_type=jnp.float32)               # (1, Lp+3H)

        # attn_weights = softmax(Linear_attn(cat(embedded, hidden)))
        logits = e_row[:, :Lp] + h_proj[:, :Lp] + attn_b_ref[...]          # pads = NEG
        m = jnp.max(logits, axis=1, keepdims=True)
        e = jnp.exp(logits - m)
        aw = e / jnp.sum(e, axis=1, keepdims=True)                         # exact divide
        aw_ref[pl.ds(t, 1), :] = aw

        # attn_applied = attn_weights @ encoder_outputs (padded rows are zero)
        applied = jnp.dot(aw, enc_ref[...], preferred_element_type=jnp.float32)  # (1, H)

        # output = relu(Linear_combine(cat(embedded, attn_applied)))
        x = (e_row[:, Lp:]
             + jnp.dot(applied, comb_wa_ref[...], preferred_element_type=jnp.float32)
             + comb_b_ref[...])
        x = jnp.maximum(x, 0.0)

        # One GRU step (PyTorch gate order r, z, n); gh uses the OLD hidden.
        # TODO(synk): for production H, pad gates to 128-lane boundaries so the
        # r/z/n slices are whole lane tiles instead of intra-vreg sub-slices.
        gi = jnp.dot(x, w_ih_ref[...], preferred_element_type=jnp.float32) + b_ih_ref[...]
        gh = h_proj[:, Lp:] + b_hh_ref[...]
        r = jax.nn.sigmoid(gi[:, 0:H] + gh[:, 0:H])
        z = jax.nn.sigmoid(gi[:, H:2 * H] + gh[:, H:2 * H])
        n = jnp.tanh(gi[:, 2 * H:3 * H] + r * gh[:, 2 * H:3 * H])
        h_new = (1.0 - z) * n + z * h
        hseq_ref[pl.ds(t, 1), :] = h_new
        return h_new

    h_scr[...] = lax.fori_loop(0, Tb, step, h_scr[...], unroll=True)


# ---------------- hoisted output projection + log_softmax kernel -------------
def output_logsoftmax_kernel(h_ref, w_ref, b_ref, logp_ref):
    # h_ref: (TB, H); w_ref: (H, Op); b_ref: (1, Op) (NEG in padded columns).
    # TODO(synk): for realistic vocab, tile out_w along Op (two-pass log-softmax)
    # so the H x Op weight is not fully VMEM-resident (mandatory on v7x).
    o = jnp.dot(h_ref[...], w_ref[...], preferred_element_type=jnp.float32) + b_ref[...]
    m = jnp.max(o, axis=1, keepdims=True)
    lse = jnp.log(jnp.sum(jnp.exp(o - m), axis=1, keepdims=True)) + m
    logp_ref[...] = o - lse


# ------------------- one-time parameter preparation --------------------------
def prepare_params(params, max_length):
    """Transpose / split / pad PyTorch-layout params into kernel layout ONCE."""
    O, H = params["embedding"].shape
    L = max_length
    Lp = _round_up(max(L, 128), 128)     # pad attention length to full lanes
    Op = _round_up(max(O, 128), 128)     # pad vocab to full lanes

    attn_wT = params["attn_w"].T                                  # (2H, L)
    we_a = jnp.zeros((H, Lp), jnp.float32).at[:, :L].set(attn_wT[:H])
    wh_a = jnp.zeros((H, Lp), jnp.float32).at[:, :L].set(attn_wT[H:])
    attn_b = jnp.full((1, Lp), NEG, jnp.float32).at[0, :L].set(params["attn_b"])

    comb_wT = params["combine_w"].T                               # (2H, H)
    we_c, wa_c = comb_wT[:H], comb_wT[H:]

    out_w = jnp.zeros((H, Op), jnp.float32).at[:, :O].set(params["out_w"].T)
    out_b = jnp.full((1, Op), NEG, jnp.float32).at[0, :O].set(params["out_b"])

    # TODO(synk): store matmul weights in bf16 for production sizes (keep all
    # elementwise / softmax math in f32, esp. on v5e); f32 kept here for a
    # tight numerical match against the f32 reference.
    return {
        "dims": {"H": H, "O": O, "L": L, "Lp": Lp, "Op": Op},
        "embedding": params["embedding"].astype(jnp.float32),     # (O, H), stays in HBM
        "w_emb": jnp.concatenate([we_a, we_c], axis=1),           # (H, Lp + H)
        "w_hid": jnp.concatenate([wh_a, params["w_hh"].T], axis=1),  # (H, Lp + 3H)
        "attn_b": attn_b,
        "comb_wa": wa_c,                                          # (H, H)
        "comb_b": params["combine_b"].reshape(1, H),
        "w_ih": params["w_ih"].T,                                 # (H, 3H)
        "b_ih": params["b_ih"].reshape(1, 3 * H),
        "b_hh": params["b_hh"].reshape(1, 3 * H),
        "out_w": out_w,                                           # (H, Op)
        "out_b": out_b,
    }


# ------------------------------ JAX wrapper ----------------------------------
def attn_decoder_decode(prepared, tokens, hidden, encoder_outputs):
    """Fused T-step (teacher-forced) decode.

    tokens: (T,) int32; hidden: (1,1,H); encoder_outputs: (L,H).
    Returns (logp (T,O), h_seq (T,H), attn_weights (T,L)).
    """
    d = prepared["dims"]
    H, O, L, Lp, Op = d["H"], d["O"], d["L"], d["Lp"], d["Op"]
    T = int(tokens.shape[0])
    Tp = _round_up(max(T, TB), TB)
    n_blocks = Tp // TB

    # Pad the time axis; padded steps run on token 0 and are sliced off.
    tok_p = jnp.zeros((Tp,), jnp.int32).at[:T].set(tokens.astype(jnp.int32))

    # (1) Token-only work, batched over all T steps (non-recurrent):
    #     embedding gather + merged [attn_e | combine_e] projection.
    #     TODO(synk): dropout on the embedding is omitted (eval-mode semantics).
    emb = jnp.take(prepared["embedding"], tok_p, axis=0)                    # (Tp, H)
    e_proj = jnp.dot(emb, prepared["w_emb"],
                     preferred_element_type=jnp.float32)                    # (Tp, Lp+H)

    enc_pad = jnp.zeros((Lp, H), jnp.float32).at[:L].set(
        encoder_outputs.astype(jnp.float32))
    h0 = hidden.reshape(1, H).astype(jnp.float32)

    # (2) Recurrent attention + GRU kernel, time-blocked (TB steps per grid step).
    # TODO(synk): add a leading "parallel" batch/beam grid axis to use the
    # second v7x TensorCore; pl.Buffered(1) on the constant-index weights would
    # halve their resident footprint there as well.
    grid_spec = pltpu.PrefetchScalarGridSpec(
        num_scalar_prefetch=0,
        grid=(n_blocks,),
        in_specs=[
            pl.BlockSpec((TB, Lp + H),     lambda b: (b, 0)),   # e_proj (pipelined)
            pl.BlockSpec((1, H),           lambda b: (0, 0)),   # h0
            pl.BlockSpec((Lp, H),          lambda b: (0, 0)),   # encoder outputs
            pl.BlockSpec((H, Lp + 3 * H),  lambda b: (0, 0)),   # w_hid
            pl.BlockSpec((1, Lp),          lambda b: (0, 0)),   # attn_b
            pl.BlockSpec((H, H),           lambda b: (0, 0)),   # comb_wa
            pl.BlockSpec((1, H),           lambda b: (0, 0)),   # comb_b
            pl.BlockSpec((H, 3 * H),       lambda b: (0, 0)),   # w_ih
            pl.BlockSpec((1, 3 * H),       lambda b: (0, 0)),   # b_ih
            pl.BlockSpec((1, 3 * H),       lambda b: (0, 0)),   # b_hh
        ],
        out_specs=(
            pl.BlockSpec((TB, H),  lambda b: (b, 0)),
            pl.BlockSpec((TB, Lp), lambda b: (b, 0)),
        ),
        scratch_shapes=[pltpu.VMEM((1, H), jnp.float32)],
    )
    h_seq, aw_seq = pl.pallas_call(
        gru_attn_recurrent_kernel,
        out_shape=(
            jax.ShapeDtypeStruct((Tp, H), jnp.float32),
            jax.ShapeDtypeStruct((Tp, Lp), jnp.float32),
        ),
        grid_spec=grid_spec,
        compiler_params=pltpu.CompilerParams(
            dimension_semantics=("arbitrary",),        # sequential hidden carry
            vmem_limit_bytes=32 * 1024 * 1024),
    )(e_proj, h0, enc_pad,
      prepared["w_hid"], prepared["attn_b"],
      prepared["comb_wa"], prepared["comb_b"],
      prepared["w_ih"], prepared["b_ih"], prepared["b_hh"])

    # (3) Output projection + log_softmax, batched over all Tp rows
    #     (hoisted off the recurrent critical path; rows are independent).
    logp = pl.pallas_call(
        output_logsoftmax_kernel,
        out_shape=jax.ShapeDtypeStruct((Tp, Op), jnp.float32),
        grid=(n_blocks,),
        in_specs=[
            pl.BlockSpec((TB, H), lambda r: (r, 0)),
            pl.BlockSpec((H, Op), lambda r: (0, 0)),
            pl.BlockSpec((1, Op), lambda r: (0, 0)),
        ],
        out_specs=pl.BlockSpec((TB, Op), lambda r: (r, 0)),
        compiler_params=pltpu.CompilerParams(
            dimension_semantics=("parallel",),
            vmem_limit_bytes=32 * 1024 * 1024),
    )(h_seq, prepared["out_w"], prepared["out_b"])

    return logp[:T, :O], h_seq[:T, :], aw_seq[:T, :L]


def attn_decoder_forward(prepared, token, hidden, encoder_outputs):
    """Single-step API matching AttnDecoderRNN.forward (uniform_attention=False)."""
    logp, h_seq, aw = attn_decoder_decode(
        prepared, jnp.reshape(token, (1,)).astype(jnp.int32), hidden, encoder_outputs)
    H = prepared["dims"]["H"]
    return logp, h_seq[-1].reshape(1, 1, H), aw


# ----------------------- deterministic parameter init ------------------------
def init_params(key, hidden_size, output_size, max_length):
    H, O, L = hidden_size, output_size, max_length
    ks = jax.random.split(key, 11)

    def u(k, shape, scale):
        return jax.random.uniform(k, shape, jnp.float32, -scale, scale)

    s_lin = 1.0 / float(jnp.sqrt(2.0 * H))
    s_gru = 1.0 / float(jnp.sqrt(1.0 * H))
    return {
        "embedding": jax.random.normal(ks[0], (O, H), jnp.float32),   # nn.Embedding ~ N(0,1)
        "attn_w": u(ks[1], (L, 2 * H), s_lin),                        # torch (out, in)
        "attn_b": u(ks[2], (L,), s_lin),
        "combine_w": u(ks[3], (H, 2 * H), s_lin),
        "combine_b": u(ks[4], (H,), s_lin),
        "w_ih": u(ks[5], (3 * H, H), s_gru),                          # gates [r, z, n]
        "w_hh": u(ks[6], (3 * H, H), s_gru),
        "b_ih": u(ks[7], (3 * H,), s_gru),
        "b_hh": u(ks[8], (3 * H,), s_gru),
        "out_w": u(ks[9], (O, H), s_gru),
        "out_b": u(ks[10], (O,), s_gru),
    }


# ----------------------------- pure-JAX reference ----------------------------
def reference_forward(params, token, hidden, encoder_outputs):
    H = hidden.shape[-1]
    emb = params["embedding"][token].reshape(1, H)
    h0 = hidden.reshape(1, H)
    logits = jnp.concatenate([emb, h0], axis=1) @ params["attn_w"].T + params["attn_b"]
    aw = jax.nn.softmax(logits, axis=1)
    applied = aw @ encoder_outputs
    x = jax.nn.relu(
        jnp.concatenate([emb, applied], axis=1) @ params["combine_w"].T
        + params["combine_b"])
    gi = x @ params["w_ih"].T + params["b_ih"]
    gh = h0 @ params["w_hh"].T + params["b_hh"]
    i_r, i_z, i_n = jnp.split(gi, 3, axis=1)
    h_r, h_z, h_n = jnp.split(gh, 3, axis=1)
    r = jax.nn.sigmoid(i_r + h_r)
    z = jax.nn.sigmoid(i_z + h_z)
    n = jnp.tanh(i_n + r * h_n)
    h_new = (1.0 - z) * n + z * h0
    logp = jax.nn.log_softmax(h_new @ params["out_w"].T + params["out_b"], axis=1)
    return logp, h_new.reshape(1, 1, H), aw


if __name__ == "__main__":
    # T > TB so the hidden-state carry across grid blocks is exercised.
    HIDDEN, OUTPUT, MAXLEN, T = 32, 16, 10, 12

    key = jax.random.PRNGKey(0)
    pkey, hkey, ekey, tkey = jax.random.split(key, 4)
    params = init_params(pkey, HIDDEN, OUTPUT, MAXLEN)
    prepared = prepare_params(params, max_length=MAXLEN)

    tokens = jax.random.randint(tkey, (T,), 0, OUTPUT).astype(jnp.int32)
    hidden0 = jax.random.normal(hkey, (1, 1, HIDDEN), jnp.float32)
    encoder_outputs = jax.random.normal(ekey, (MAXLEN, HIDDEN), jnp.float32)

    # Fused multi-step decode (recurrent kernel + hoisted output-projection kernel).
    logp_seq, h_seq, aw_seq = attn_decoder_decode(prepared, tokens, hidden0, encoder_outputs)
    jax.block_until_ready((logp_seq, h_seq, aw_seq))

    # Reference: loop the module's forward step-by-step with the same tokens.
    h_ref = hidden0
    for t in range(T):
        ref_logp, h_ref, ref_aw = reference_forward(params, tokens[t], h_ref, encoder_outputs)
        assert jnp.allclose(logp_seq[t], ref_logp[0], atol=2e-3, rtol=2e-3)
        assert jnp.allclose(aw_seq[t], ref_aw[0], atol=2e-3, rtol=2e-3)
        assert jnp.allclose(h_seq[t], h_ref.reshape(-1), atol=2e-3, rtol=2e-3)

    # Single-step API (matches AttnDecoderRNN.forward signature/semantics).
    logp1, h1, aw1 = attn_decoder_forward(prepared, tokens[0], hidden0, encoder_outputs)
    jax.block_until_ready((logp1, h1, aw1))
    r_logp1, r_h1, r_aw1 = reference_forward(params, tokens[0], hidden0, encoder_outputs)
    assert jnp.allclose(logp1, r_logp1, atol=2e-3, rtol=2e-3)
    assert jnp.allclose(h1, r_h1, atol=2e-3, rtol=2e-3)
    assert jnp.allclose(aw1, r_aw1, atol=2e-3, rtol=2e-3)

    print("KERNEL_OK")
</pallas_src>

<mosaic_0001>
module attributes {stable_mosaic.version = 11 : i64} {
  func.func @gru_attn_recurrent_kernel(%arg0: i32, %arg1: memref<8x160xf32, #tpu.memory_space<vmem>>, %arg2: memref<1x32xf32, #tpu.memory_space<vmem>>, %arg3: memref<128x32xf32, #tpu.memory_space<vmem>>, %arg4: memref<32x224xf32, #tpu.memory_space<vmem>>, %arg5: memref<1x128xf32, #tpu.memory_space<vmem>>, %arg6: memref<32x32xf32, #tpu.memory_space<vmem>>, %arg7: memref<1x32xf32, #tpu.memory_space<vmem>>, %arg8: memref<32x96xf32, #tpu.memory_space<vmem>>, %arg9: memref<1x96xf32, #tpu.memory_space<vmem>>, %arg10: memref<1x96xf32, #tpu.memory_space<vmem>>, %arg11: memref<8x32xf32, #tpu.memory_space<vmem>>, %arg12: memref<8x128xf32, #tpu.memory_space<vmem>>, %arg13: memref<1x32xf32, #tpu.memory_space<vmem>>) attributes {dimension_semantics = [#tpu.dimension_semantics<arbitrary>], iteration_bounds = array<i64: 2>, scalar_prefetch = 0 : i64, scratch_operands = 1 : i64, tpu.core_type = #tpu.core_type<tc>, window_params = [{transform_indices = @transform_0, window_bounds = array<i64: 8, 160>}, {pipeline_mode = #tpu.pipeline_mode<synchronous>, transform_indices = @transform_1, window_bounds = array<i64: 1, 32>}, {pipeline_mode = #tpu.pipeline_mode<synchronous>, transform_indices = @transform_2, window_bounds = array<i64: 128, 32>}, {pipeline_mode = #tpu.pipeline_mode<synchronous>, transform_indices = @transform_3, window_bounds = array<i64: 32, 224>}, {pipeline_mode = #tpu.pipeline_mode<synchronous>, transform_indices = @transform_4, window_bounds = array<i64: 1, 128>}, {pipeline_mode = #tpu.pipeline_mode<synchronous>, transform_indices = @transform_5, window_bounds = array<i64: 32, 32>}, {pipeline_mode = #tpu.pipeline_mode<synchronous>, transform_indices = @transform_6, window_bounds = array<i64: 1, 32>}, {pipeline_mode = #tpu.pipeline_mode<synchronous>, transform_indices = @transform_7, window_bounds = array<i64: 32, 96>}, {pipeline_mode = #tpu.pipeline_mode<synchronous>, transform_indices = @transform_8, window_bounds = array<i64: 1, 96>}, {pipeline_mode = #tpu.pipeline_mode<synchronous>, transform_indices = @transform_9, window_bounds = array<i64: 1, 96>}, {transform_indices = @transform_10, window_bounds = array<i64: 8, 32>}, {transform_indices = @transform_11, window_bounds = array<i64: 8, 128>}]} {
    %c0_i32 = arith.constant 0 : i32
    %0 = arith.cmpi eq, %arg0, %c0_i32 : i32
    %1 = arith.extui %0 : i1 to i32
    %c0_i32_0 = arith.constant 0 : i32
    %2 = arith.cmpi ne, %1, %c0_i32_0 : i32
    scf.if %2 {
      %c0_236 = arith.constant 0 : index
      %c0_237 = arith.constant 0 : index
      %525 = vector.load %arg2[%c0_236, %c0_237] : memref<1x32xf32, #tpu.memory_space<vmem>>, vector<1x32xf32>
      %c0_238 = arith.constant 0 : index
      %c0_239 = arith.constant 0 : index
      %526 = vector.load %arg13[%c0_238, %c0_239] : memref<1x32xf32, #tpu.memory_space<vmem>>, vector<1x32xf32>
      tpu.vector_store %arg13[%c0_238, %c0_239], %525 {strides = array<i32>} : memref<1x32xf32, #tpu.memory_space<vmem>>, vector<1x32xf32>,
    } else {
    }
    %c0 = arith.constant 0 : index
    %c0_1 = arith.constant 0 : index
    %3 = vector.load %arg13[%c0, %c0_1] : memref<1x32xf32, #tpu.memory_space<vmem>>, vector<1x32xf32>
    %c0_i32_2 = arith.constant 0 : i32
    %4 = arith.index_cast %c0_i32_2 : i32 to index
    %c0_3 = arith.constant 0 : index
    %5 = vector.load %arg1[%4, %c0_3] : memref<8x160xf32, #tpu.memory_space<vmem>>, vector<1x160xf32>
    %c0_4 = arith.constant 0 : index
    %c0_5 = arith.constant 0 : index
    %6 = vector.load %arg4[%c0_4, %c0_5] : memref<32x224xf32, #tpu.memory_space<vmem>>, vector<32x224xf32>
    %cst = arith.constant dense<0.000000e+00> : vector<1x224xf32>
    %7 = tpu.matmul %3, %6, %cst {dimension_numbers = #tpu.dot_dimension_numbers<[1], [0], [0], [1], [0, 0, 1, 1], [], []>} : vector<1x32xf32>, vector<32x224xf32>, vector<1x224xf32> -> vector<1x224xf32>
    %8 = vector.extract_strided_slice %5 {offsets = [0, 0], sizes = [1, 128], strides = [1, 1]} : vector<1x160xf32> to vector<1x128xf32>
    %9 = vector.extract_strided_slice %7 {offsets = [0, 0], sizes = [1, 128], strides = [1, 1]} : vector<1x224xf32> to vector<1x128xf32>
    %10 = arith.addf %8, %9 : vector<1x128xf32>
    %c0_6 = arith.constant 0 : index
    %c0_7 = arith.constant 0 : index
    %11 = vector.load %arg5[%c0_6, %c0_7] : memref<1x128xf32, #tpu.memory_space<vmem>>, vector<1x128xf32>
    %12 = arith.addf %10, %11 : vector<1x128xf32>
    %cst_8 = arith.constant dense<0xFF800000> : vector<1xf32>
    %13 = vector.multi_reduction <maximumf>, %12, %cst_8 [1] : vector<1x128xf32> to vector<1xf32>
    %14 = vector.shape_cast %13 : vector<1xf32> to vector<1x1xf32>
    %15 = vector.broadcast %14 : vector<1x1xf32> to vector<1x128xf32>
    %16 = arith.subf %12, %15 : vector<1x128xf32>
    %17 = math.exp %16 : vector<1x128xf32>
    %cst_9 = arith.constant dense<0.000000e+00> : vector<1xf32>
    %18 = vector.multi_reduction <add>, %17, %cst_9 [1] : vector<1x128xf32> to vector<1xf32>
    %19 = vector.shape_cast %18 : vector<1xf32> to vector<1x1xf32>
    %20 = vector.broadcast %19 : vector<1x1xf32> to vector<1x128xf32>
    %21 = arith.divf %17, %20 : vector<1x128xf32>
    %22 = arith.index_cast %c0_i32_2 : i32 to index
    %c0_10 = arith.constant 0 : index
    %23 = vector.load %arg12[%22, %c0_10] : memref<8x128xf32, #tpu.memory_space<vmem>>, vector<1x128xf32>
    tpu.vector_store %arg12[%22, %c0_10], %21 {strides = array<i32>} : memref<8x128xf32, #tpu.memory_space<vmem>>, vector<1x128xf32>,
    %c0_11 = arith.constant 0 : index
    %c0_12 = arith.constant 0 : index
    %24 = vector.load %arg3[%c0_11, %c0_12] : memref<128x32xf32, #tpu.memory_space<vmem>>, vector<128x32xf32>
    %cst_13 = arith.constant dense<0.000000e+00> : vector<1x32xf32>
    %25 = tpu.matmul %21, %24, %cst_13 {dimension_numbers = #tpu.dot_dimension_numbers<[1], [0], [0], [1], [0, 0, 1, 1], [], []>} : vector<1x128xf32>, vector<128x32xf32>, vector<1x32xf32> -> vector<1x32xf32>
    %26 = vector.extract_strided_slice %5 {offsets = [0, 128], sizes = [1, 32], strides = [1, 1]} : vector<1x160xf32> to vector<1x32xf32>
    %c0_14 = arith.constant 0 : index
    %c0_15 = arith.constant 0 : index
    %27 = vector.load %arg6[%c0_14, %c0_15] : memref<32x32xf32, #tpu.memory_space<vmem>>, vector<32x32xf32>
    %cst_16 = arith.constant dense<0.000000e+00> : vector<1x32xf32>
    %28 = tpu.matmul %25, %27, %cst_16 {dimension_numbers = #tpu.dot_dimension_numbers<[1], [0], [0], [1], [0, 0, 1, 1], [], []>} : vector<1x32xf32>, vector<32x32xf32>, vector<1x32xf32> -> vector<1x32xf32>
    %29 = arith.addf %26, %28 : vector<1x32xf32>
    %c0_17 = arith.constant 0 : index
    %c0_18 = arith.constant 0 : index
    %30 = vector.load %arg7[%c0_17, %c0_18] : memref<1x32xf32, #tpu.memory_space<vmem>>, vector<1x32xf32>
    %31 = arith.addf %29, %30 : vector<1x32xf32>
    %cst_19 = arith.constant 0.000000e+00 : f32
    %32 = vector.broadcast %cst_19 : f32 to vector<1x32xf32>
    %33 = arith.maximumf %31, %32 : vector<1x32xf32>
    %c0_20 = arith.constant 0 : index
    %c0_21 = arith.constant 0 : index
    %34 = vector.load %arg8[%c0_20, %c0_21] : memref<32x96xf32, #tpu.memory_space<vmem>>, vector<32x96xf32>
    %cst_22 = arith.constant dense<0.000000e+00> : vector<1x96xf32>
    %35 = tpu.matmul %33, %34, %cst_22 {dimension_numbers = #tpu.dot_dimension_numbers<[1], [0], [0], [1], [0, 0, 1, 1], [], []>} : vector<1x32xf32>, vector<32x96xf32>, vector<1x96xf32> -> vector<1x96xf32>
    %c0_23 = arith.constant 0 : index
    %c0_24 = arith.constant 0 : index
    %36 = vector.load %arg9[%c0_23, %c0_24] : memref<1x96xf32, #tpu.memory_space<vmem>>, vector<1x96xf32>
    %37 = arith.addf %35, %36 : vector<1x96xf32>
    %38 = vector.extract_strided_slice %7 {offsets = [0, 128], sizes = [1, 96], strides = [1, 1]} : vector<1x224xf32> to vector<1x96xf32>
    %c0_25 = arith.constant 0 : index
    %c0_26 = arith.constant 0 : index
    %39 = vector.load %arg10[%c0_25, %c0_26] : memref<1x96xf32, #tpu.memory_space<vmem>>, vector<1x96xf32>
    %40 = arith.addf %38, %39 : vector<1x96xf32>
    %41 = vector.extract_strided_slice %37 {offsets = [0, 0], sizes = [1, 32], strides = [1, 1]} : vector<1x96xf32> to vector<1x32xf32>
    %42 = vector.extract_strided_slice %40 {offsets = [0, 0], sizes = [1, 32], strides = [1, 1]} : vector<1x96xf32> to vector<1x32xf32>
    %43 = arith.addf %41, %42 : vector<1x32xf32>
    %44 = arith.negf %43 : vector<1x32xf32>
    %45 = math.exp %44 : vector<1x32xf32>
    %cst_27 = arith.constant 1.000000e+00 : f32
    %46 = vector.broadcast %cst_27 : f32 to vector<1x32xf32>
    %47 = arith.addf %46, %45 : vector<1x32xf32>
    %48 = arith.divf %46, %47 : vector<1x32xf32>
    %49 = vector.extract_strided_slice %37 {offsets = [0, 32], sizes = [1, 32], strides = [1, 1]} : vector<1x96xf32> to vector<1x32xf32>
    %50 = vector.extract_strided_slice %40 {offsets = [0, 32], sizes = [1, 32], strides = [1, 1]} : vector<1x96xf32> to vector<1x32xf32>
    %51 = arith.addf %49, %50 : vector<1x32xf32>
    %52 = arith.negf %51 : vector<1x32xf32>
    %53 = math.exp %52 : vector<1x32xf32>
    %cst_28 = arith.constant 1.000000e+00 : f32
    %54 = vector.broadcast %cst_28 : f32 to vector<1x32xf32>
    %55 = arith.addf %54, %53 : vector<1x32xf32>
    %56 = arith.divf %54, %55 : vector<1x32xf32>
    %57 = vector.extract_strided_slice %37 {offsets = [0, 64], sizes = [1, 32], strides = [1, 1]} : vector<1x96xf32> to vector<1x32xf32>
    %58 = vector.extract_strided_slice %40 {offsets = [0, 64], sizes = [1, 32], strides = [1, 1]} : vector<1x96xf32> to vector<1x32xf32>
    %59 = arith.mulf %48, %58 : vector<1x32xf32>
    %60 = arith.addf %57, %59 : vector<1x32xf32>
    %61 = math.tanh %60 : vector<1x32xf32>
    %cst_29 = arith.constant 1.000000e+00 : f32
    %62 = vector.broadcast %cst_29 : f32 to vector<1x32xf32>
    %63 = arith.subf %62, %56 : vector<1x32xf32>
    %64 = arith.mulf %63, %61 : vector<1x32xf32>
    %65 = arith.mulf %56, %3 : vector<1x32xf32>
    %66 = arith.addf %64, %65 : vector<1x32xf32>
    %67 = arith.index_cast %c0_i32_2 : i32 to index
    %c0_30 = arith.constant 0 : index
    %68 = vector.load %arg11[%67, %c0_30] : memref<8x32xf32, #tpu.memory_space<vmem>>, vector<1x32xf32>
    tpu.vector_store %arg11[%67, %c0_30], %66 {strides = array<i32>} : memref<8x32xf32, #tpu.memory_space<vmem>>, vector<1x32xf32>,
    %c1_i32 = arith.constant 1 : i32
    %69 = arith.index_cast %c1_i32 : i32 to index
    %c0_31 = arith.constant 0 : index
    %70 = vector.load %arg1[%69, %c0_31] : memref<8x160xf32, #tpu.memory_space<vmem>>, vector<1x160xf32>
    %c0_32 = arith.constant 0 : index
    %c0_33 = arith.constant 0 : index
    %71 = vector.load %arg4[%c0_32, %c0_33] : memref<32x224xf32, #tpu.memory_space<vmem>>, vector<32x224xf32>
    %cst_34 = arith.constant dense<0.000000e+00> : vector<1x224xf32>
    %72 = tpu.matmul %66, %71, %cst_34 {dimension_numbers = #tpu.dot_dimension_numbers<[1], [0], [0], [1], [0, 0, 1, 1], [], []>} : vector<1x32xf32>, vector<32x224xf32>, vector<1x224xf32> -> vector<1x224xf32>
    %73 = vector.extract_strided_slice %70 {offsets = [0, 0], sizes = [1, 128], strides = [1, 1]} : vector<1x160xf32> to vector<1x128xf32>
    %74 = vector.extract_strided_slice %72 {offsets = [0, 0], sizes = [1, 128], strides = [1, 1]} : vector<1x224xf32> to vector<1x128xf32>
    %75 = arith.addf %73, %74 : vector<1x128xf32>
    %c0_35 = arith.constant 0 : index
    %c0_36 = arith.constant 0 : index
    %76 = vector.load %arg5[%c0_35, %c0_36] : memref<1x128xf32, #tpu.memory_space<vmem>>, vector<1x128xf32>
    %77 = arith.addf %75, %76 : vector<1x128xf32>
    %cst_37 = arith.constant dense<0xFF800000> : vector<1xf32>
    %78 = vector.multi_reduction <maximumf>, %77, %cst_37 [1] : vector<1x128xf32> to vector<1xf32>
    %79 = vector.shape_cast %78 : vector<1xf32> to vector<1x1xf32>
    %80 = vector.broadcast %79 : vector<1x1xf32> to vector<1x128xf32>
    %81 = arith.subf %77, %80 : vector<1x128xf32>
    %82 = math.exp %81 : vector<1x128xf32>
    %cst_38 = arith.constant dense<0.000000e+00> : vector<1xf32>
    %83 = vector.multi_reduction <add>, %82, %cst_38 [1] : vector<1x128xf32> to vector<1xf32>
    %84 = vector.shape_cast %83 : vector<1xf32> to vector<1x1xf32>
    %85 = vector.broadcast %84 : vector<1x1xf32> to vector<1x128xf32>
    %86 = arith.divf %82, %85 : vector<1x128xf32>
    %87 = arith.index_cast %c1_i32 : i32 to index
    %c0_39 = arith.constant 0 : index
    %88 = vector.load %arg12[%87, %c0_39] : memref<8x128xf32, #tpu.memory_space<vmem>>, vector<1x128xf32>
    tpu.vector_store %arg12[%87, %c0_39], %86 {strides = array<i32>} : memref<8x128xf32, #tpu.memory_space<vmem>>, vector<1x128xf32>,
    %c0_40 = arith.constant 0 : index
    %c0_41 = arith.constant 0 : index
    %89 = vector.load %arg3[%c0_40, %c0_41] : memref<128x32xf32, #tpu.memory_space<vmem>>, vector<128x32xf32>
    %cst_42 = arith.constant dense<0.000000e+00> : vector<1x32xf32>
    %90 = tpu.matmul %86, %89, %cst_42 {dimension_numbers = #tpu.dot_dimension_numbers<[1], [0], [0], [1], [0, 0, 1, 1], [], []>} : vector<1x128xf32>, vector<128x32xf32>, vector<1x32xf32> -> vector<1x32xf32>
    %91 = vector.extract_strided_slice %70 {offsets = [0, 128], sizes = [1, 32], strides = [1, 1]} : vector<1x160xf32> to vector<1x32xf32>
    %c0_43 = arith.constant 0 : index
    %c0_44 = arith.constant 0 : index
    %92 = vector.load %arg6[%c0_43, %c0_44] : memref<32x32xf32, #tpu.memory_space<vmem>>, vector<32x32xf32>
    %cst_45 = arith.constant dense<0.000000e+00> : vector<1x32xf32>
    %93 = tpu.matmul %90, %92, %cst_45 {dimension_numbers = #tpu.dot_dimension_numbers<[1], [0], [0], [1], [0, 0, 1, 1], [], []>} : vector<1x32xf32>, vector<32x32xf32>, vector<1x32xf32> -> vector<1x32xf32>
    %94 = arith.addf %91, %93 : vector<1x32xf32>
    %c0_46 = arith.constant 0 : index
    %c0_47 = arith.constant 0 : index
    %95 = vector.load %arg7[%c0_46, %c0_47] : memref<1x32xf32, #tpu.memory_space<vmem>>, vector<1x32xf32>
    %96 = arith.addf %94, %95 : vector<1x32xf32>
    %cst_48 = arith.constant 0.000000e+00 : f32
    %97 = vector.broadcast %cst_48 : f32 to vector<1x32xf32>
    %98 = arith.maximumf %96, %97 : vector<1x32xf32>
    %c0_49 = arith.constant 0 : index
    %c0_50 = arith.constant 0 : index
    %99 = vector.load %arg8[%c0_49, %c0_50] : memref<32x96xf32, #tpu.memory_space<vmem>>, vector<32x96xf32>
    %cst_51 = arith.constant dense<0.000000e+00> : vector<1x96xf32>
    %100 = tpu.matmul %98, %99, %cst_51 {dimension_numbers = #tpu.dot_dimension_numbers<[1], [0], [0], [1], [0, 0, 1, 1], [], []>} : vector<1x32xf32>, vector<32x96xf32>, vector<1x96xf32> -> vector<1x96xf32>
    %c0_52 = arith.constant 0 : index
    %c0_53 = arith.constant 0 : index
    %101 = vector.load %arg9[%c0_52, %c0_53] : memref<1x96xf32, #tpu.memory_space<vmem>>, vector<1x96xf32>
    %102 = arith.addf %100, %101 : vector<1x96xf32>
    %103 = vector.extract_strided_slice %72 {offsets = [0, 128], sizes = [1, 96], strides = [1, 1]} : vector<1x224xf32> to vector<1x96xf32>
    %c0_54 = arith.constant 0 : index
    %c0_55 = arith.constant 0 : index
    %104 = vector.load %arg10[%c0_54, %c0_55] : memref<1x96xf32, #tpu.memory_space<vmem>>, vector<1x96xf32>
    %105 = arith.addf %103, %104 : vector<1x96xf32>
    %106 = vector.extract_strided_slice %102 {offsets = [0, 0], sizes = [1, 32], strides = [1, 1]} : vector<1x96xf32> to vector<1x32xf32>
    %107 = vector.extract_strided_slice %105 {offsets = [0, 0], sizes = [1, 32], strides = [1, 1]} : vector<1x96xf32> to vector<1x32xf32>
    %108 = arith.addf %106, %107 : vector<1x32xf32>
    %109 = arith.negf %108 : vector<1x32xf32>
    %110 = math.exp %109 : vector<1x32xf32>
    %cst_56 = arith.constant 1.000000e+00 : f32
    %111 = vector.broadcast %cst_56 : f32 to vector<1x32xf32>
    %112 = arith.addf %111, %110 : vector<1x32xf32>
    %113 = arith.divf %111, %112 : vector<1x32xf32>
    %114 = vector.extract_strided_slice %102 {offsets = [0, 32], sizes = [1, 32], strides = [1, 1]} : vector<1x96xf32> to vector<1x32xf32>
    %115 = vector.extract_strided_slice %105 {offsets = [0, 32], sizes = [1, 32], strides = [1, 1]} : vector<1x96xf32> to vector<1x32xf32>
    %116 = arith.addf %114, %115 : vector<1x32xf32>
    %117 = arith.negf %116 : vector<1x32xf32>
    %118 = math.exp %117 : vector<1x32xf32>
    %cst_57 = arith.constant 1.000000e+00 : f32
    %119 = vector.broadcast %cst_57 : f32 to vector<1x32xf32>
    %120 = arith.addf %119, %118 : vector<1x32xf32>
    %121 = arith.divf %119, %120 : vector<1x32xf32>
    %122 = vector.extract_strided_slice %102 {offsets = [0, 64], sizes = [1, 32], strides = [1, 1]} : vector<1x96xf32> to vector<1x32xf32>
    %123 = vector.extract_strided_slice %105 {offsets = [0, 64], sizes = [1, 32], strides = [1, 1]} : vector<1x96xf32> to vector<1x32xf32>
    %124 = arith.mulf %113, %123 : vector<1x32xf32>
    %125 = arith.addf %122, %124 : vector<1x32xf32>
    %126 = math.tanh %125 : vector<1x32xf32>
    %cst_58 = arith.constant 1.000000e+00 : f32
    %127 = vector.broadcast %cst_58 : f32 to vector<1x32xf32>
    %128 = arith.subf %127, %121 : vector<1x32xf32>
    %129 = arith.mulf %128, %126 : vector<1x32xf32>
    %130 = arith.mulf %121, %66 : vector<1x32xf32>
    %131 = arith.addf %129, %130 : vector<1x32xf32>
    %132 = arith.index_cast %c1_i32 : i32 to index
    %c0_59 = arith.constant 0 : index
    %133 = vector.load %arg11[%132, %c0_59] : memref<8x32xf32, #tpu.memory_space<vmem>>, vector<1x32xf32>
    tpu.vector_store %arg11[%132, %c0_59], %131 {strides = array<i32>} : memref<8x32xf32, #tpu.memory_space<vmem>>, vector<1x32xf32>,
    %c2_i32 = arith.constant 2 : i32
    %134 = arith.index_cast %c2_i32 : i32 to index
    %c0_60 = arith.constant 0 : index
    %135 = vector.load %arg1[%134, %c0_60] : memref<8x160xf32, #tpu.memory_space<vmem>>, vector<1x160xf32>
    %c0_61 = arith.constant 0 : index
    %c0_62 = arith.constant 0 : index
    %136 = vector.load %arg4[%c0_61, %c0_62] : memref<32x224xf32, #tpu.memory_space<vmem>>, vector<32x224xf32>
    %cst_63 = arith.constant dense<0.000000e+00> : vector<1x224xf32>
    %137 = tpu.matmul %131, %136, %cst_63 {dimension_numbers = #tpu.dot_dimension_numbers<[1], [0], [0], [1], [0, 0, 1, 1], [], []>} : vector<1x32xf32>, vector<32x224xf32>, vector<1x224xf32> -> vector<1x224xf32>
    %138 = vector.extract_strided_slice %135 {offsets = [0, 0], sizes = [1, 128], strides = [1, 1]} : vector<1x160xf32> to vector<1x128xf32>
    %139 = vector.extract_strided_slice %137 {offsets = [0, 0], sizes = [1, 128], strides = [1, 1]} : vector<1x224xf32> to vector<1x128xf32>
    %140 = arith.addf %138, %139 : vector<1x128xf32>
    %c0_64 = arith.constant 0 : index
    %c0_65 = arith.constant 0 : index
    %141 = vector.load %arg5[%c0_64, %c0_65] : memref<1x128xf32, #tpu.memory_space<vmem>>, vector<1x128xf32>
    %142 = arith.addf %140, %141 : vector<1x128xf32>
    %cst_66 = arith.constant dense<0xFF800000> : vector<1xf32>
    %143 = vector.multi_reduction <maximumf>, %142, %cst_66 [1] : vector<1x128xf32> to vector<1xf32>
    %144 = vector.shape_cast %143 : vector<1xf32> to vector<1x1xf32>
    %145 = vector.broadcast %144 : vector<1x1xf32> to vector<1x128xf32>
    %146 = arith.subf %142, %145 : vector<1x128xf32>
    %147 = math.exp %146 : vector<1x128xf32>
    %cst_67 = arith.constant dense<0.000000e+00> : vector<1xf32>
    %148 = vector.multi_reduction <add>, %147, %cst_67 [1] : vector<1x128xf32> to vector<1xf32>
    %149 = vector.shape_cast %148 : vector<1xf32> to vector<1x1xf32>
    %150 = vector.broadcast %149 : vector<1x1xf32> to vector<1x128xf32>
    %151 = arith.divf %147, %150 : vector<1x128xf32>
    %152 = arith.index_cast %c2_i32 : i32 to index
    %c0_68 = arith.constant 0 : index
    %153 = vector.load %arg12[%152, %c0_68] : memref<8x128xf32, #tpu.memory_space<vmem>>, vector<1x128xf32>
    tpu.vector_store %arg12[%152, %c0_68], %151 {strides = array<i32>} : memref<8x128xf32, #tpu.memory_space<vmem>>, vector<1x128xf32>,
    %c0_69 = arith.constant 0 : index
    %c0_70 = arith.constant 0 : index
    %154 = vector.load %arg3[%c0_69, %c0_70] : memref<128x32xf32, #tpu.memory_space<vmem>>, vector<128x32xf32>
    %cst_71 = arith.constant dense<0.000000e+00> : vector<1x32xf32>
    %155 = tpu.matmul %151, %154, %cst_71 {dimension_numbers = #tpu.dot_dimension_numbers<[1], [0], [0], [1], [0, 0, 1, 1], [], []>} : vector<1x128xf32>, vector<128x32xf32>, vector<1x32xf32> -> vector<1x32xf32>
    %156 = vector.extract_strided_slice %135 {offsets = [0, 128], sizes = [1, 32], strides = [1, 1]} : vector<1x160xf32> to vector<1x32xf32>
    %c0_72 = arith.constant 0 : index
    %c0_73 = arith.constant 0 : index
    %157 = vector.load %arg6[%c0_72, %c0_73] : memref<32x32xf32, #tpu.memory_space<vmem>>, vector<32x32xf32>
    %cst_74 = arith.constant dense<0.000000e+00> : vector<1x32xf32>
    %158 = tpu.matmul %155, %157, %cst_74 {dimension_numbers = #tpu.dot_dimension_numbers<[1], [0], [0], [1], [0, 0, 1, 1], [], []>} : vector<1x32xf32>, vector<32x32xf32>, vector<1x32xf32> -> vector<1x32xf32>
    %159 = arith.addf %156, %158 : vector<1x32xf32>
    %c0_75 = arith.constant 0 : index
    %c0_76 = arith.constant 0 : index
    %160 = vector.load %arg7[%c0_75, %c0_76] : memref<1x32xf32, #tpu.memory_space<vmem>>, vector<1x32xf32>
    %161 = arith.addf %159, %160 : vector<1x32xf32>
    %cst_77 = arith.constant 0.000000e+00 : f32
    %162 = vector.broadcast %cst_77 : f32 to vector<1x32xf32>
    %163 = arith.maximumf %161, %162 : vector<1x32xf32>
    %c0_78 = arith.constant 0 : index
    %c0_79 = arith.constant 0 : index
    %164 = vector.load %arg8[%c0_78, %c0_79] : memref<32x96xf32, #tpu.memory_space<vmem>>, vector<32x96xf32>
    %cst_80 = arith.constant dense<0.000000e+00> : vector<1x96xf32>
    %165 = tpu.matmul %163, %164, %cst_80 {dimension_numbers = #tpu.dot_dimension_numbers<[1], [0], [0], [1], [0, 0, 1, 1], [], []>} : vector<1x32xf32>, vector<32x96xf32>, vector<1x96xf32> -> vector<1x96xf32>
    %c0_81 = arith.constant 0 : index
    %c0_82 = arith.constant 0 : index
    %166 = vector.load %arg9[%c0_81, %c0_82] : memref<1x96xf32, #tpu.memory_space<vmem>>, vector<1x96xf32>
    %167 = arith.addf %165, %166 : vector<1x96xf32>
    %168 = vector.extract_strided_slice %137 {offsets = [0, 128], sizes = [1, 96], strides = [1, 1]} : vector<1x224xf32> to vector<1x96xf32>
    %c0_83 = arith.constant 0 : index
    %c0_84 = arith.constant 0 : index
    %169 = vector.load %arg10[%c0_83, %c0_84] : memref<1x96xf32, #tpu.memory_space<vmem>>, vector<1x96xf32>
    %170 = arith.addf %168, %169 : vector<1x96xf32>
    %171 = vector.extract_strided_slice %167 {offsets = [0, 0], sizes = [1, 32], strides = [1, 1]} : vector<1x96xf32> to vector<1x32xf32>
    %172 = vector.extract_strided_slice %170 {offsets = [0, 0], sizes = [1, 32], strides = [1, 1]} : vector<1x96xf32> to vector<1x32xf32>
    %173 = arith.addf %171, %172 : vector<1x32xf32>
    %174 = arith.negf %173 : vector<1x32xf32>
    %175 = math.exp %174 : vector<1x32xf32>
    %cst_85 = arith.constant 1.000000e+00 : f32
    %176 = vector.broadcast %cst_85 : f32 to vector<1x32xf32>
    %177 = arith.addf %176, %175 : vector<1x32xf32>
    %178 = arith.divf %176, %177 : vector<1x32xf32>
    %179 = vector.extract_strided_slice %167 {offsets = [0, 32], sizes = [1, 32], strides = [1, 1]} : vector<1x96xf32> to vector<1x32xf32>
    %180 = vector.extract_strided_slice %170 {offsets = [0, 32], sizes = [1, 32], strides = [1, 1]} : vector<1x96xf32> to vector<1x32xf32>
    %181 = arith.addf %179, %180 : vector<1x32xf32>
    %182 = arith.negf %181 : vector<1x32xf32>
    %183 = math.exp %182 : vector<1x32xf32>
    %cst_86 = arith.constant 1.000000e+00 : f32
    %184 = vector.broadcast %cst_86 : f32 to vector<1x32xf32>
    %185 = arith.addf %184, %183 : vector<1x32xf32>
    %186 = arith.divf %184, %185 : vector<1x32xf32>
    %187 = vector.extract_strided_slice %167 {offsets = [0, 64], sizes = [1, 32], strides = [1, 1]} : vector<1x96xf32> to vector<1x32xf32>
    %188 = vector.extract_strided_slice %170 {offsets = [0, 64], sizes = [1, 32], strides = [1, 1]} : vector<1x96xf32> to vector<1x32xf32>
    %189 = arith.mulf %178, %188 : vector<1x32xf32>
    %190 = arith.addf %187, %189 : vector<1x32xf32>
    %191 = math.tanh %190 : vector<1x32xf32>
    %cst_87 = arith.constant 1.000000e+00 : f32
    %192 = vector.broadcast %cst_87 : f32 to vector<1x32xf32>
    %193 = arith.subf %192, %186 : vector<1x32xf32>
    %194 = arith.mulf %193, %191 : vector<1x32xf32>
    %195 = arith.mulf %186, %131 : vector<1x32xf32>
    %196 = arith.addf %194, %195 : vector<1x32xf32>
    %197 = arith.index_cast %c2_i32 : i32 to index
    %c0_88 = arith.constant 0 : index
    %198 = vector.load %arg11[%197, %c0_88] : memref<8x32xf32, #tpu.memory_space<vmem>>, vector<1x32xf32>
    tpu.vector_store %arg11[%197, %c0_88], %196 {strides = array<i32>} : memref<8x32xf32, #tpu.memory_space<vmem>>, vector<1x32xf32>,
    %c3_i32 = arith.constant 3 : i32
    %199 = arith.index_cast %c3_i32 : i32 to index
    %c0_89 = arith.constant 0 : index
    %200 = vector.load %arg1[%199, %c0_89] : memref<8x160xf32, #tpu.memory_space<vmem>>, vector<1x160xf32>
    %c0_90 = arith.constant 0 : index
    %c0_91 = arith.constant 0 : index
    %201 = vector.load %arg4[%c0_90, %c0_91] : memref<32x224xf32, #tpu.memory_space<vmem>>, vector<32x224xf32>
    %cst_92 = arith.constant dense<0.000000e+00> : vector<1x224xf32>
    %202 = tpu.matmul %196, %201, %cst_92 {dimension_numbers = #tpu.dot_dimension_numbers<[1], [0], [0], [1], [0, 0, 1, 1], [], []>} : vector<1x32xf32>, vector<32x224xf32>, vector<1x224xf32> -> vector<1x224xf32>
    %203 = vector.extract_strided_slice %200 {offsets = [0, 0], sizes = [1, 128], strides = [1, 1]} : vector<1x160xf32> to vector<1x128xf32>
    %204 = vector.extract_strided_slice %202 {offsets = [0, 0], sizes = [1, 128], strides = [1, 1]} : vector<1x224xf32> to vector<1x128xf32>
    %205 = arith.addf %203, %204 : vector<1x128xf32>
    %c0_93 = arith.constant 0 : index
    %c0_94 = arith.constant 0 : index
    %206 = vector.load %arg5[%c0_93, %c0_94] : memref<1x128xf32, #tpu.memory_space<vmem>>, vector<1x128xf32>
    %207 = arith.addf %205, %206 : vector<1x128xf32>
    %cst_95 = arith.constant dense<0xFF800000> : vector<1xf32>
    %208 = vector.multi_reduction <maximumf>, %207, %cst_95 [1] : vector<1x128xf32> to vector<1xf32>
    %209 = vector.shape_cast %208 : vector<1xf32> to vector<1x1xf32>
    %210 = vector.broadcast %209 : vector<1x1xf32> to vector<1x128xf32>
    %211 = arith.subf %207, %210 : vector<1x128xf32>
    %212 = math.exp %211 : vector<1x128xf32>
    %cst_96 = arith.constant dense<0.000000e+00> : vector<1xf32>
    %213 = vector.multi_reduction <add>, %212, %cst_96 [1] : vector<1x128xf32> to vector<1xf32>
    %214 = vector.shape_cast %213 : vector<1xf32> to vector<1x1xf32>
    %215 = vector.broadcast %214 : vector<1x1xf32> to vector<1x128xf32>
    %216 = arith.divf %212, %215 : vector<1x128xf32>
    %217 = arith.index_cast %c3_i32 : i32 to index
    %c0_97 = arith.constant 0 : index
    %218 = vector.load %arg12[%217, %c0_97] : memref<8x128xf32, #tpu.memory_space<vmem>>, vector<1x128xf32>
    tpu.vector_store %arg12[%217, %c0_97], %216 {strides = array<i32>} : memref<8x128xf32, #tpu.memory_space<vmem>>, vector<1x128xf32>,
    %c0_98 = arith.constant 0 : index
    %c0_99 = arith.constant 0 : index
    %219 = vector.load %arg3[%c0_98, %c0_99] : memref<128x32xf32, #tpu.memory_space<vmem>>, vector<128x32xf32>
    %cst_100 = arith.constant dense<0.000000e+00> : vector<1x32xf32>
    %220 = tpu.matmul %216, %219, %cst_100 {dimension_numbers = #tpu.dot_dimension_numbers<[1], [0], [0], [1], [0, 0, 1, 1], [], []>} : vector<1x128xf32>, vector<128x32xf32>, vector<1x32xf32> -> vector<1x32xf32>
    %221 = vector.extract_strided_slice %200 {offsets = [0, 128], sizes = [1, 32], strides = [1, 1]} : vector<1x160xf32> to vector<1x32xf32>
    %c0_101 = arith.constant 0 : index
    %c0_102 = arith.constant 0 : index
    %222 = vector.load %arg6[%c0_101, %c0_102] : memref<32x32xf32, #tpu.memory_space<vmem>>, vector<32x32xf32>
    %cst_103 = arith.constant dense<0.000000e+00> : vector<1x32xf32>
    %223 = tpu.matmul %220, %222, %cst_103 {dimension_numbers = #tpu.dot_dimension_numbers<[1], [0], [0], [1], [0, 0, 1, 1], [], []>} : vector<1x32xf32>, vector<32x32xf32>, vector<1x32xf32> -> vector<1x32xf32>
    %224 = arith.addf %221, %223 : vector<1x32xf32>
    %c0_104 = arith.constant 0 : index
    %c0_105 = arith.constant 0 : index
    %225 = vector.load %arg7[%c0_104, %c0_105] : memref<1x32xf32, #tpu.memory_space<vmem>>, vector<1x32xf32>
    %226 = arith.addf %224, %225 : vector<1x32xf32>
    %cst_106 = arith.constant 0.000000e+00 : f32
    %227 = vector.broadcast %cst_106 : f32 to vector<1x32xf32>
    %228 = arith.maximumf %226, %227 : vector<1x32xf32>
    %c0_107 = arith.constant 0 : index
    %c0_108 = arith.constant 0 : index
    %229 = vector.load %arg8[%c0_107, %c0_108] : memref<32x96xf32, #tpu.memory_space<vmem>>, vector<32x96xf32>
    %cst_109 = arith.constant dense<0.000000e+00> : vector<1x96xf32>
    %230 = tpu.matmul %228, %229, %cst_109 {dimension_numbers = #tpu.dot_dimension_numbers<[1], [0], [0], [1], [0, 0, 1, 1], [], []>} : vector<1x32xf32>, vector<32x96xf32>, vector<1x96xf32> -> vector<1x96xf32>
    %c0_110 = arith.constant 0 : index
    %c0_111 = arith.constant 0 : index
    %231 = vector.load %arg9[%c0_110, %c0_111] : memref<1x96xf32, #tpu.memory_space<vmem>>, vector<1x96xf32>
    %232 = arith.addf %230, %231 : vector<1x96xf32>
    %233 = vector.extract_strided_slice %202 {offsets = [0, 128], sizes = [1, 96], strides = [1, 1]} : vector<1x224xf32> to vector<1x96xf32>
    %c0_112 = arith.constant 0 : index
    %c0_113 = arith.constant 0 : index
    %234 = vector.load %arg10[%c0_112, %c0_113] : memref<1x96xf32, #tpu.memory_space<vmem>>, vector<1x96xf32>
    %235 = arith.addf %233, %234 : vector<1x96xf32>
    %236 = vector.extract_strided_slice %232 {offsets = [0, 0], sizes = [1, 32], strides = [1, 1]} : vector<1x96xf32> to vector<1x32xf32>
    %237 = vector.extract_strided_slice %235 {offsets = [0, 0], sizes = [1, 32], strides = [1, 1]} : vector<1x96xf32> to vector<1x32xf32>
    %238 = arith.addf %236, %237 : vector<1x32xf32>
    %239 = arith.negf %238 : vector<1x32xf32>
    %240 = math.exp %239 : vector<1x32xf32>
    %cst_114 = arith.constant 1.000000e+00 : f32
    %241 = vector.broadcast %cst_114 : f32 to vector<1x32xf32>
    %242 = arith.addf %241, %240 : vector<1x32xf32>
    %243 = arith.divf %241, %242 : vector<1x32xf32>
    %244 = vector.extract_strided_slice %232 {offsets = [0, 32], sizes = [1, 32], strides = [1, 1]} : vector<1x96xf32> to vector<1x32xf32>
    %245 = vector.extract_strided_slice %235 {offsets = [0, 32], sizes = [1, 32], strides = [1, 1]} : vector<1x96xf32> to vector<1x32xf32>
    %246 = arith.addf %244, %245 : vector<1x32xf32>
    %247 = arith.negf %246 : vector<1x32xf32>
    %248 = math.exp %247 : vector<1x32xf32>
    %cst_115 = arith.constant 1.000000e+00 : f32
    %249 = vector.broadcast %cst_115 : f32 to vector<1x32xf32>
    %250 = arith.addf %249, %248 : vector<1x32xf32>
    %251 = arith.divf %249, %250 : vector<1x32xf32>
    %252 = vector.extract_strided_slice %232 {offsets = [0, 64], sizes = [1, 32], strides = [1, 1]} : vector<1x96xf32> to vector<1x32xf32>
    %253 = vector.extract_strided_slice %235 {offsets = [0, 64], sizes = [1, 32], strides = [1, 1]} : vector<1x96xf32> to vector<1x32xf32>
    %254 = arith.mulf %243, %253 : vector<1x32xf32>
    %255 = arith.addf %252, %254 : vector<1x32xf32>
    %256 = math.tanh %255 : vector<1x32xf32>
    %cst_116 = arith.constant 1.000000e+00 : f32
    %257 = vector.broadcast %cst_116 : f32 to vector<1x32xf32>
    %258 = arith.subf %257, %251 : vector<1x32xf32>
    %259 = arith.mulf %258, %256 : vector<1x32xf32>
    %260 = arith.mulf %251, %196 : vector<1x32xf32>
    %261 = arith.addf %259, %260 : vector<1x32xf32>
    %262 = arith.index_cast %c3_i32 : i32 to index
    %c0_117 = arith.constant 0 : index
    %263 = vector.load %arg11[%262, %c0_117] : memref<8x32xf32, #tpu.memory_space<vmem>>, vector<1x32xf32>
    tpu.vector_store %arg11[%262, %c0_117], %261 {strides = array<i32>} : memref<8x32xf32, #tpu.memory_space<vmem>>, vector<1x32xf32>,
    %c4_i32 = arith.constant 4 : i32
    %264 = arith.index_cast %c4_i32 : i32 to index
    %c0_118 = arith.constant 0 : index
    %265 = vector.load %arg1[%264, %c0_118] : memref<8x160xf32, #tpu.memory_space<vmem>>, vector<1x160xf32>
    %c0_119 = arith.constant 0 : index
    %c0_120 = arith.constant 0 : index
    %266 = vector.load %arg4[%c0_119, %c0_120] : memref<32x224xf32, #tpu.memory_space<vmem>>, vector<32x224xf32>
    %cst_121 = arith.constant dense<0.000000e+00> : vector<1x224xf32>
    %267 = tpu.matmul %261, %266, %cst_121 {dimension_numbers = #tpu.dot_dimension_numbers<[1], [0], [0], [1], [0, 0, 1, 1], [], []>} : vector<1x32xf32>, vector<32x224xf32>, vector<1x224xf32> -> vector<1x224xf32>
    %268 = vector.extract_strided_slice %265 {offsets = [0, 0], sizes = [1, 128], strides = [1, 1]} : vector<1x160xf32> to vector<1x128xf32>
    %269 = vector.extract_strided_slice %267 {offsets = [0, 0], sizes = [1, 128], strides = [1, 1]} : vector<1x224xf32> to vector<1x128xf32>
    %270 = arith.addf %268, %269 : vector<1x128xf32>
    %c0_122 = arith.constant 0 : index
    %c0_123 = arith.constant 0 : index
    %271 = vector.load %arg5[%c0_122, %c0_123] : memref<1x128xf32, #tpu.memory_space<vmem>>, vector<1x128xf32>
    %272 = arith.addf %270, %271 : vector<1x128xf32>
    %cst_124 = arith.constant dense<0xFF800000> : vector<1xf32>
    %273 = vector.multi_reduction <maximumf>, %272, %cst_124 [1] : vector<1x128xf32> to vector<1xf32>
    %274 = vector.shape_cast %273 : vector<1xf32> to vector<1x1xf32>
    %275 = vector.broadcast %274 : vector<1x1xf32> to vector<1x128xf32>
    %276 = arith.subf %272, %275 : vector<1x128xf32>
    %277 = math.exp %276 : vector<1x128xf32>
    %cst_125 = arith.constant dense<0.000000e+00> : vector<1xf32>
    %278 = vector.multi_reduction <add>, %277, %cst_125 [1] : vector<1x128xf32> to vector<1xf32>
    %279 = vector.shape_cast %278 : vector<1xf32> to vector<1x1xf32>
    %280 = vector.broadcast %279 : vector<1x1xf32> to vector<1x128xf32>
    %281 = arith.divf %277, %280 : vector<1x128xf32>
    %282 = arith.index_cast %c4_i32 : i32 to index
    %c0_126 = arith.constant 0 : index
    %283 = vector.load %arg12[%282, %c0_126] : memref<8x128xf32, #tpu.memory_space<vmem>>, vector<1x128xf32>
    tpu.vector_store %arg12[%282, %c0_126], %281 {strides = array<i32>} : memref<8x128xf32, #tpu.memory_space<vmem>>, vector<1x128xf32>,
    %c0_127 = arith.constant 0 : index
    %c0_128 = arith.constant 0 : index
    %284 = vector.load %arg3[%c0_127, %c0_128] : memref<128x32xf32, #tpu.memory_space<vmem>>, vector<128x32xf32>
    %cst_129 = arith.constant dense<0.000000e+00> : vector<1x32xf32>
    %285 = tpu.matmul %281, %284, %cst_129 {dimension_numbers = #tpu.dot_dimension_numbers<[1], [0], [0], [1], [0, 0, 1, 1], [], []>} : vector<1x128xf32>, vector<128x32xf32>, vector<1x32xf32> -> vector<1x32xf32>
    %286 = vector.extract_strided_slice %265 {offsets = [0, 128], sizes = [1, 32], strides = [1, 1]} : vector<1x160xf32> to vector<1x32xf32>
    %c0_130 = arith.constant 0 : index
    %c0_131 = arith.constant 0 : index
    %287 = vector.load %arg6[%c0_130, %c0_131] : memref<32x32xf32, #tpu.memory_space<vmem>>, vector<32x32xf32>
    %cst_132 = arith.constant dense<0.000000e+00> : vector<1x32xf32>
    %288 = tpu.matmul %285, %287, %cst_132 {dimension_numbers = #tpu.dot_dimension_numbers<[1], [0], [0], [1], [0, 0, 1, 1], [], []>} : vector<1x32xf32>, vector<32x32xf32>, vector<1x32xf32> -> vector<1x32xf32>
    %289 = arith.addf %286, %288 : vector<1x32xf32>
    %c0_133 = arith.constant 0 : index
    %c0_134 = arith.constant 0 : index
    %290 = vector.load %arg7[%c0_133, %c0_134] : memref<1x32xf32, #tpu.memory_space<vmem>>, vector<1x32xf32>
    %291 = arith.addf %289, %290 : vector<1x32xf32>
    %cst_135 = arith.constant 0.000000e+00 : f32
    %292 = vector.broadcast %cst_135 : f32 to vector<1x32xf32>
    %293 = arith.maximumf %291, %292 : vector<1x32xf32>
    %c0_136 = arith.constant 0 : index
    %c0_137 = arith.constant 0 : index
    %294 = vector.load %arg8[%c0_136, %c0_137] : memref<32x96xf32, #tpu.memory_space<vmem>>, vector<32x96xf32>
    %cst_138 = arith.constant dense<0.000000e+00> : vector<1x96xf32>
    %295 = tpu.matmul %293, %294, %cst_138 {dimension_numbers = #tpu.dot_dimension_numbers<[1], [0], [0], [1], [0, 0, 1, 1], [], []>} : vector<1x32xf32>, vector<32x96xf32>, vector<1x96xf32> -> vector<1x96xf32>
    %c0_139 = arith.constant 0 : index
    %c0_140 = arith.constant 0 : index
    %296 = vector.load %arg9[%c0_139, %c0_140] : memref<1x96xf32, #tpu.memory_space<vmem>>, vector<1x96xf32>
    %297 = arith.addf %295, %296 : vector<1x96xf32>
    %298 = vector.extract_strided_slice %267 {offsets = [0, 128], sizes = [1, 96], strides = [1, 1]} : vector<1x224xf32> to vector<1x96xf32>
    %c0_141 = arith.constant 0 : index
    %c0_142 = arith.constant 0 : index
    %299 = vector.load %arg10[%c0_141, %c0_142] : memref<1x96xf32, #tpu.memory_space<vmem>>, vector<1x96xf32>
    %300 = arith.addf %298, %299 : vector<1x96xf32>
    %301 = vector.extract_strided_slice %297 {offsets = [0, 0], sizes = [1, 32], strides = [1, 1]} : vector<1x96xf32> to vector<1x32xf32>
    %302 = vector.extract_strided_slice %300 {offsets = [0, 0], sizes = [1, 32], strides = [1, 1]} : vector<1x96xf32> to vector<1x32xf32>
    %303 = arith.addf %301, %302 : vector<1x32xf32>
    %304 = arith.negf %303 : vector<1x32xf32>
    %305 = math.exp %304 : vector<1x32xf32>
    %cst_143 = arith.constant 1.000000e+00 : f32
    %306 = vector.broadcast %cst_143 : f32 to vector<1x32xf32>
    %307 = arith.addf %306, %305 : vector<1x32xf32>
    %308 = arith.divf %306, %307 : vector<1x32xf32>
    %309 = vector.extract_strided_slice %297 {offsets = [0, 32], sizes = [1, 32], strides = [1, 1]} : vector<1x96xf32> to vector<1x32xf32>
    %310 = vector.extract_strided_slice %300 {offsets = [0, 32], sizes = [1, 32], strides = [1, 1]} : vector<1x96xf32> to vector<1x32xf32>
    %311 = arith.addf %309, %310 : vector<1x32xf32>
    %312 = arith.negf %311 : vector<1x32xf32>
    %313 = math.exp %312 : vector<1x32xf32>
    %cst_144 = arith.constant 1.000000e+00 : f32
    %314 = vector.broadcast %cst_144 : f32 to vector<1x32xf32>
    %315 = arith.addf %314, %313 : vector<1x32xf32>
    %316 = arith.divf %314, %315 : vector<1x32xf32>
    %317 = vector.extract_strided_slice %297 {offsets = [0, 64], sizes = [1, 32], strides = [1, 1]} : vector<1x96xf32> to vector<1x32xf32>
    %318 = vector.extract_strided_slice %300 {offsets = [0, 64], sizes = [1, 32], strides = [1, 1]} : vector<1x96xf32> to vector<1x32xf32>
    %319 = arith.mulf %308, %318 : vector<1x32xf32>
    %320 = arith.addf %317, %319 : vector<1x32xf32>
    %321 = math.tanh %320 : vector<1x32xf32>
    %cst_145 = arith.constant 1.000000e+00 : f32
    %322 = vector.broadcast %cst_145 : f32 to vector<1x32xf32>
    %323 = arith.subf %322, %316 : vector<1x32xf32>
    %324 = arith.mulf %323, %321 : vector<1x32xf32>
    %325 = arith.mulf %316, %261 : vector<1x32xf32>
    %326 = arith.addf %324, %325 : vector<1x32xf32>
    %327 = arith.index_cast %c4_i32 : i32 to index
    %c0_146 = arith.constant 0 : index
    %328 = vector.load %arg11[%327, %c0_146] : memref<8x32xf32, #tpu.memory_space<vmem>>, vector<1x32xf32>
    tpu.vector_store %arg11[%327, %c0_146], %326 {strides = array<i32>} : memref<8x32xf32, #tpu.memory_space<vmem>>, vector<1x32xf32>,
    %c5_i32 = arith.constant 5 : i32
    %329 = arith.index_cast %c5_i32 : i32 to index
    %c0_147 = arith.constant 0 : index
    %330 = vector.load %arg1[%329, %c0_147] : memref<8x160xf32, #tpu.memory_space<vmem>>, vector<1x160xf32>
    %c0_148 = arith.constant 0 : index
    %c0_149 = arith.constant 0 : index
    %331 = vector.load %arg4[%c0_148, %c0_149] : memref<32x224xf32, #tpu.memory_space<vmem>>, vector<32x224xf32>
    %cst_150 = arith.constant dense<0.000000e+00> : vector<1x224xf32>
    %332 = tpu.matmul %326, %331, %cst_150 {dimension_numbers = #tpu.dot_dimension_numbers<[1], [0], [0], [1], [0, 0, 1, 1], [], []>} : vector<1x32xf32>, vector<32x224xf32>, vector<1x224xf32> -> vector<1x224xf32>
    %333 = vector.extract_strided_slice %330 {offsets = [0, 0], sizes = [1, 128], strides = [1, 1]} : vector<1x160xf32> to vector<1x128xf32>
    %334 = vector.extract_strided_slice %332 {offsets = [0, 0], sizes = [1, 128], strides = [1, 1]} : vector<1x224xf32> to vector<1x128xf32>
    %335 = arith.addf %333, %334 : vector<1x128xf32>
    %c0_151 = arith.constant 0 : index
    %c0_152 = arith.constant 0 : index
    %336 = vector.load %arg5[%c0_151, %c0_152] : memref<1x128xf32, #tpu.memory_space<vmem>>, vector<1x128xf32>
    %337 = arith.addf %335, %336 : vector<1x128xf32>
    %cst_153 = arith.constant dense<0xFF800000> : vector<1xf32>
    %338 = vector.multi_reduction <maximumf>, %337, %cst_153 [1] : vector<1x128xf32> to vector<1xf32>
    %339 = vector.shape_cast %338 : vector<1xf32> to vector<1x1xf32>
    %340 = vector.broadcast %339 : vector<1x1xf32> to vector<1x128xf32>
    %341 = arith.subf %337, %340 : vector<1x128xf32>
    %342 = math.exp %341 : vector<1x128xf32>
    %cst_154 = arith.constant dense<0.000000e+00> : vector<1xf32>
    %343 = vector.multi_reduction <add>, %342, %cst_154 [1] : vector<1x128xf32> to vector<1xf32>
    %344 = vector.shape_cast %343 : vector<1xf32> to vector<1x1xf32>
    %345 = vector.broadcast %344 : vector<1x1xf32> to vector<1x128xf32>
    %346 = arith.divf %342, %345 : vector<1x128xf32>
    %347 = arith.index_cast %c5_i32 : i32 to index
    %c0_155 = arith.constant 0 : index
    %348 = vector.load %arg12[%347, %c0_155] : memref<8x128xf32, #tpu.memory_space<vmem>>, vector<1x128xf32>
    tpu.vector_store %arg12[%347, %c0_155], %346 {strides = array<i32>} : memref<8x128xf32, #tpu.memory_space<vmem>>, vector<1x128xf32>,
    %c0_156 = arith.constant 0 : index
    %c0_157 = arith.constant 0 : index
    %349 = vector.load %arg3[%c0_156, %c0_157] : memref<128x32xf32, #tpu.memory_space<vmem>>, vector<128x32xf32>
    %cst_158 = arith.constant dense<0.000000e+00> : vector<1x32xf32>
    %350 = tpu.matmul %346, %349, %cst_158 {dimension_numbers = #tpu.dot_dimension_numbers<[1], [0], [0], [1], [0, 0, 1, 1], [], []>} : vector<1x128xf32>, vector<128x32xf32>, vector<1x32xf32> -> vector<1x32xf32>
    %351 = vector.extract_strided_slice %330 {offsets = [0, 128], sizes = [1, 32], strides = [1, 1]} : vector<1x160xf32> to vector<1x32xf32>
    %c0_159 = arith.constant 0 : index
    %c0_160 = arith.constant 0 : index
    %352 = vector.load %arg6[%c0_159, %c0_160] : memref<32x32xf32, #tpu.memory_space<vmem>>, vector<32x32xf32>
    %cst_161 = arith.constant dense<0.000000e+00> : vector<1x32xf32>
    %353 = tpu.matmul %350, %352, %cst_161 {dimension_numbers = #tpu.dot_dimension_numbers<[1], [0], [0], [1], [0, 0, 1, 1], [], []>} : vector<1x32xf32>, vector<32x32xf32>, vector<1x32xf32> -> vector<1x32xf32>
    %354 = arith.addf %351, %353 : vector<1x32xf32>
    %c0_162 = arith.constant 0 : index
    %c0_163 = arith.constant 0 : index
    %355 = vector.load %arg7[%c0_162, %c0_163] : memref<1x32xf32, #tpu.memory_space<vmem>>, vector<1x32xf32>
    %356 = arith.addf %354, %355 : vector<1x32xf32>
    %cst_164 = arith.constant 0.000000e+00 : f32
    %357 = vector.broadcast %cst_164 : f32 to vector<1x32xf32>
    %358 = arith.maximumf %356, %357 : vector<1x32xf32>
    %c0_165 = arith.constant 0 : index
    %c0_166 = arith.constant 0 : index
    %359 = vector.load %arg8[%c0_165, %c0_166] : memref<32x96xf32, #tpu.memory_space<vmem>>, vector<32x96xf32>
    %cst_167 = arith.constant dense<0.000000e+00> : vector<1x96xf32>
    %360 = tpu.matmul %358, %359, %cst_167 {dimension_numbers = #tpu.dot_dimension_numbers<[1], [0], [0], [1], [0, 0, 1, 1], [], []>} : vector<1x32xf32>, vector<32x96xf32>, vector<1x96xf32> -> vector<1x96xf32>
    %c0_168 = arith.constant 0 : index
    %c0_169 = arith.constant 0 : index
    %361 = vector.load %arg9[%c0_168, %c0_169] : memref<1x96xf32, #tpu.memory_space<vmem>>, vector<1x96xf32>
    %362 = arith.addf %360, %361 : vector<1x96xf32>
    %363 = vector.extract_strided_slice %332 {offsets = [0, 128], sizes = [1, 96], strides = [1, 1]} : vector<1x224xf32> to vector<1x96xf32>
    %c0_170 = arith.constant 0 : index
    %c0_171 = arith.constant 0 : index
    %364 = vector.load %arg10[%c0_170, %c0_171] : memref<1x96xf32, #tpu.memory_space<vmem>>, vector<1x96xf32>
    %365 = arith.addf %363, %364 : vector<1x96xf32>
    %366 = vector.extract_strided_slice %362 {offsets = [0, 0], sizes = [1, 32], strides = [1, 1]} : vector<1x96xf32> to vector<1x32xf32>
    %367 = vector.extract_strided_slice %365 {offsets = [0, 0], sizes = [1, 32], strides = [1, 1]} : vector<1x96xf32> to vector<1x32xf32>
    %368 = arith.addf %366, %367 : vector<1x32xf32>
    %369 = arith.negf %368 : vector<1x32xf32>
    %370 = math.exp %369 : vector<1x32xf32>
    %cst_172 = arith.constant 1.000000e+00 : f32
    %371 = vector.broadcast %cst_172 : f32 to vector<1x32xf32>
    %372 = arith.addf %371, %370 : vector<1x32xf32>
    %373 = arith.divf %371, %372 : vector<1x32xf32>
    %374 = vector.extract_strided_slice %362 {offsets = [0, 32], sizes = [1, 32], strides = [1, 1]} : vector<1x96xf32> to vector<1x32xf32>
    %375 = vector.extract_strided_slice %365 {offsets = [0, 32], sizes = [1, 32], strides = [1, 1]} : vector<1x96xf32> to vector<1x32xf32>
    %376 = arith.addf %374, %375 : vector<1x32xf32>
    %377 = arith.negf %376 : vector<1x32xf32>
    %378 = math.exp %377 : vector<1x32xf32>
    %cst_173 = arith.constant 1.000000e+00 : f32
    %379 = vector.broadcast %cst_173 : f32 to vector<1x32xf32>
    %380 = arith.addf %379, %378 : vector<1x32xf32>
    %381 = arith.divf %379, %380 : vector<1x32xf32>
    %382 = vector.extract_strided_slice %362 {offsets = [0, 64], sizes = [1, 32], strides = [1, 1]} : vector<1x96xf32> to vector<1x32xf32>
    %383 = vector.extract_strided_slice %365 {offsets = [0, 64], sizes = [1, 32], strides = [1, 1]} : vector<1x96xf32> to vector<1x32xf32>
    %384 = arith.mulf %373, %383 : vector<1x32xf32>
    %385 = arith.addf %382, %384 : vector<1x32xf32>
    %386 = math.tanh %385 : vector<1x32xf32>
    %cst_174 = arith.constant 1.000000e+00 : f32
    %387 = vector.broadcast %cst_174 : f32 to vector<1x32xf32>
    %388 = arith.subf %387, %381 : vector<1x32xf32>
    %389 = arith.mulf %388, %386 : vector<1x32xf32>
    %390 = arith.mulf %381, %326 : vector<1x32xf32>
    %391 = arith.addf %389, %390 : vector<1x32xf32>
    %392 = arith.index_cast %c5_i32 : i32 to index
    %c0_175 = arith.constant 0 : index
    %393 = vector.load %arg11[%392, %c0_175] : memref<8x32xf32, #tpu.memory_space<vmem>>, vector<1x32xf32>
    tpu.vector_store %arg11[%392, %c0_175], %391 {strides = array<i32>} : memref<8x32xf32, #tpu.memory_space<vmem>>, vector<1x32xf32>,
    %c6_i32 = arith.constant 6 : i32
    %394 = arith.index_cast %c6_i32 : i32 to index
    %c0_176 = arith.constant 0 : index
    %395 = vector.load %arg1[%394, %c0_176] : memref<8x160xf32, #tpu.memory_space<vmem>>, vector<1x160xf32>
    %c0_177 = arith.constant 0 : index
    %c0_178 = arith.constant 0 : index
    %396 = vector.load %arg4[%c0_177, %c0_178] : memref<32x224xf32, #tpu.memory_space<vmem>>, vector<32x224xf32>
    %cst_179 = arith.constant dense<0.000000e+00> : vector<1x224xf32>
    %397 = tpu.matmul %391, %396, %cst_179 {dimension_numbers = #tpu.dot_dimension_numbers<[1], [0], [0], [1], [0, 0, 1, 1], [], []>} : vector<1x32xf32>, vector<32x224xf32>, vector<1x224xf32> -> vector<1x224xf32>
    %398 = vector.extract_strided_slice %395 {offsets = [0, 0], sizes = [1, 128], strides = [1, 1]} : vector<1x160xf32> to vector<1x128xf32>
    %399 = vector.extract_strided_slice %397 {offsets = [0, 0], sizes = [1, 128], strides = [1, 1]} : vector<1x224xf32> to vector<1x128xf32>
    %400 = arith.addf %398, %399 : vector<1x128xf32>
    %c0_180 = arith.constant 0 : index
    %c0_181 = arith.constant 0 : index
    %401 = vector.load %arg5[%c0_180, %c0_181] : memref<1x128xf32, #tpu.memory_space<vmem>>, vector<1x128xf32>
    %402 = arith.addf %400, %401 : vector<1x128xf32>
    %cst_182 = arith.constant dense<0xFF800000> : vector<1xf32>
    %403 = vector.multi_reduction <maximumf>, %402, %cst_182 [1] : vector<1x128xf32> to vector<1xf32>
    %404 = vector.shape_cast %403 : vector<1xf32> to vector<1x1xf32>
    %405 = vector.broadcast %404 : vector<1x1xf32> to vector<1x128xf32>
    %406 = arith.subf %402, %405 : vector<1x128xf32>
    %407 = math.exp %406 : vector<1x128xf32>
    %cst_183 = arith.constant dense<0.000000e+00> : vector<1xf32>
    %408 = vector.multi_reduction <add>, %407, %cst_183 [1] : vector<1x128xf32> to vector<1xf32>
    %409 = vector.shape_cast %408 : vector<1xf32> to vector<1x1xf32>
    %410 = vector.broadcast %409 : vector<1x1xf32> to vector<1x128xf32>
    %411 = arith.divf %407, %410 : vector<1x128xf32>
    %412 = arith.index_cast %c6_i32 : i32 to index
    %c0_184 = arith.constant 0 : index
    %413 = vector.load %arg12[%412, %c0_184] : memref<8x128xf32, #tpu.memory_space<vmem>>, vector<1x128xf32>
    tpu.vector_store %arg12[%412, %c0_184], %411 {strides = array<i32>} : memref<8x128xf32, #tpu.memory_space<vmem>>, vector<1x128xf32>,
    %c0_185 = arith.constant 0 : index
    %c0_186 = arith.constant 0 : index
    %414 = vector.load %arg3[%c0_185, %c0_186] : memref<128x32xf32, #tpu.memory_space<vmem>>, vector<128x32xf32>
    %cst_187 = arith.constant dense<0.000000e+00> : vector<1x32xf32>
    %415 = tpu.matmul %411, %414, %cst_187 {dimension_numbers = #tpu.dot_dimension_numbers<[1], [0], [0], [1], [0, 0, 1, 1], [], []>} : vector<1x128xf32>, vector<128x32xf32>, vector<1x32xf32> -> vector<1x32xf32>
    %416 = vector.extract_strided_slice %395 {offsets = [0, 128], sizes = [1, 32], strides = [1, 1]} : vector<1x160xf32> to vector<1x32xf32>
    %c0_188 = arith.constant 0 : index
    %c0_189 = arith.constant 0 : index
    %417 = vector.load %arg6[%c0_188, %c0_189] : memref<32x32xf32, #tpu.memory_space<vmem>>, vector<32x32xf32>
    %cst_190 = arith.constant dense<0.000000e+00> : vector<1x32xf32>
    %418 = tpu.matmul %415, %417, %cst_190 {dimension_numbers = #tpu.dot_dimension_numbers<[1], [0], [0], [1], [0, 0, 1, 1], [], []>} : vector<1x32xf32>, vector<32x32xf32>, vector<1x32xf32> -> vector<1x32xf32>
    %419 = arith.addf %416, %418 : vector<1x32xf32>
    %c0_191 = arith.constant 0 : index
    %c0_192 = arith.constant 0 : index
    %420 = vector.load %arg7[%c0_191, %c0_192] : memref<1x32xf32, #tpu.memory_space<vmem>>, vector<1x32xf32>
    %421 = arith.addf %419, %420 : vector<1x32xf32>
    %cst_193 = arith.constant 0.000000e+00 : f32
    %422 = vector.broadcast %cst_193 : f32 to vector<1x32xf32>
    %423 = arith.maximumf %421, %422 : vector<1x32xf32>
    %c0_194 = arith.constant 0 : index
    %c0_195 = arith.constant 0 : index
    %424 = vector.load %arg8[%c0_194, %c0_195] : memref<32x96xf32, #tpu.memory_space<vmem>>, vector<32x96xf32>
    %cst_196 = arith.constant dense<0.000000e+00> : vector<1x96xf32>
    %425 = tpu.matmul %423, %424, %cst_196 {dimension_numbers = #tpu.dot_dimension_numbers<[1], [0], [0], [1], [0, 0, 1, 1], [], []>} : vector<1x32xf32>, vector<32x96xf32>, vector<1x96xf32> -> vector<1x96xf32>
    %c0_197 = arith.constant 0 : index
    %c0_198 = arith.constant 0 : index
    %426 = vector.load %arg9[%c0_197, %c0_198] : memref<1x96xf32, #tpu.memory_space<vmem>>, vector<1x96xf32>
    %427 = arith.addf %425, %426 : vector<1x96xf32>
    %428 = vector.extract_strided_slice %397 {offsets = [0, 128], sizes = [1, 96], strides = [1, 1]} : vector<1x224xf32> to vector<1x96xf32>
    %c0_199 = arith.constant 0 : index
    %c0_200 = arith.constant 0 : index
    %429 = vector.load %arg10[%c0_199, %c0_200] : memref<1x96xf32, #tpu.memory_space<vmem>>, vector<1x96xf32>
    %430 = arith.addf %428, %429 : vector<1x96xf32>
    %431 = vector.extract_strided_slice %427 {offsets = [0, 0], sizes = [1, 32], strides = [1, 1]} : vector<1x96xf32> to vector<1x32xf32>
    %432 = vector.extract_strided_slice %430 {offsets = [0, 0], sizes = [1, 32], strides = [1, 1]} : vector<1x96xf32> to vector<1x32xf32>
    %433 = arith.addf %431, %432 : vector<1x32xf32>
    %434 = arith.negf %433 : vector<1x32xf32>
    %435 = math.exp %434 : vector<1x32xf32>
    %cst_201 = arith.constant 1.000000e+00 : f32
    %436 = vector.broadcast %cst_201 : f32 to vector<1x32xf32>
    %437 = arith.addf %436, %435 : vector<1x32xf32>
    %438 = arith.divf %436, %437 : vector<1x32xf32>
    %439 = vector.extract_strided_slice %427 {offsets = [0, 32], sizes = [1, 32], strides = [1, 1]} : vector<1x96xf32> to vector<1x32xf32>
    %440 = vector.extract_strided_slice %430 {offsets = [0, 32], sizes = [1, 32], strides = [1, 1]} : vector<1x96xf32> to vector<1x32xf32>
    %441 = arith.addf %439, %440 : vector<1x32xf32>
    %442 = arith.negf %441 : vector<1x32xf32>
    %443 = math.exp %442 : vector<1x32xf32>
    %cst_202 = arith.constant 1.000000e+00 : f32
    %444 = vector.broadcast %cst_202 : f32 to vector<1x32xf32>
    %445 = arith.addf %444, %443 : vector<1x32xf32>
    %446 = arith.divf %444, %445 : vector<1x32xf32>
    %447 = vector.extract_strided_slice %427 {offsets = [0, 64], sizes = [1, 32], strides = [1, 1]} : vector<1x96xf32> to vector<1x32xf32>
    %448 = vector.extract_strided_slice %430 {offsets = [0, 64], sizes = [1, 32], strides = [1, 1]} : vector<1x96xf32> to vector<1x32xf32>
    %449 = arith.mulf %438, %448 : vector<1x32xf32>
    %450 = arith.addf %447, %449 : vector<1x32xf32>
    %451 = math.tanh %450 : vector<1x32xf32>
    %cst_203 = arith.constant 1.000000e+00 : f32
    %452 = vector.broadcast %cst_203 : f32 to vector<1x32xf32>
    %453 = arith.subf %452, %446 : vector<1x32xf32>
    %454 = arith.mulf %453, %451 : vector<1x32xf32>
    %455 = arith.mulf %446, %391 : vector<1x32xf32>
    %456 = arith.addf %454, %455 : vector<1x32xf32>
    %457 = arith.index_cast %c6_i32 : i32 to index
    %c0_204 = arith.constant 0 : index
    %458 = vector.load %arg11[%457, %c0_204] : memref<8x32xf32, #tpu.memory_space<vmem>>, vector<1x32xf32>
    tpu.vector_store %arg11[%457, %c0_204], %456 {strides = array<i32>} : memref<8x32xf32, #tpu.memory_space<vmem>>, vector<1x32xf32>,
    %c7_i32 = arith.constant 7 : i32
    %459 = arith.index_cast %c7_i32 : i32 to index
    %c0_205 = arith.constant 0 : index
    %460 = vector.load %arg1[%459, %c0_205] : memref<8x160xf32, #tpu.memory_space<vmem>>, vector<1x160xf32>
    %c0_206 = arith.constant 0 : index
    %c0_207 = arith.constant 0 : index
    %461 = vector.load %arg4[%c0_206, %c0_207] : memref<32x224xf32, #tpu.memory_space<vmem>>, vector<32x224xf32>
    %cst_208 = arith.constant dense<0.000000e+00> : vector<1x224xf32>
    %462 = tpu.matmul %456, %461, %cst_208 {dimension_numbers = #tpu.dot_dimension_numbers<[1], [0], [0], [1], [0, 0, 1, 1], [], []>} : vector<1x32xf32>, vector<32x224xf32>, vector<1x224xf32> -> vector<1x224xf32>
    %463 = vector.extract_strided_slice %460 {offsets = [0, 0], sizes = [1, 128], strides = [1, 1]} : vector<1x160xf32> to vector<1x128xf32>
    %464 = vector.extract_strided_slice %462 {offsets = [0, 0], sizes = [1, 128], strides = [1, 1]} : vector<1x224xf32> to vector<1x128xf32>
    %465 = arith.addf %463, %464 : vector<1x128xf32>
    %c0_209 = arith.constant 0 : index
    %c0_210 = arith.constant 0 : index
    %466 = vector.load %arg5[%c0_209, %c0_210] : memref<1x128xf32, #tpu.memory_space<vmem>>, vector<1x128xf32>
    %467 = arith.addf %465, %466 : vector<1x128xf32>
    %cst_211 = arith.constant dense<0xFF800000> : vector<1xf32>
    %468 = vector.multi_reduction <maximumf>, %467, %cst_211 [1] : vector<1x128xf32> to vector<1xf32>
    %469 = vector.shape_cast %468 : vector<1xf32> to vector<1x1xf32>
    %470 = vector.broadcast %469 : vector<1x1xf32> to vector<1x128xf32>
    %471 = arith.subf %467, %470 : vector<1x128xf32>
    %472 = math.exp %471 : vector<1x128xf32>
    %cst_212 = arith.constant dense<0.000000e+00> : vector<1xf32>
    %473 = vector.multi_reduction <add>, %472, %cst_212 [1] : vector<1x128xf32> to vector<1xf32>
    %474 = vector.shape_cast %473 : vector<1xf32> to vector<1x1xf32>
    %475 = vector.broadcast %474 : vector<1x1xf32> to vector<1x128xf32>
    %476 = arith.divf %472, %475 : vector<1x128xf32>
    %477 = arith.index_cast %c7_i32 : i32 to index
    %c0_213 = arith.constant 0 : index
    %478 = vector.load %arg12[%477, %c0_213] : memref<8x128xf32, #tpu.memory_space<vmem>>, vector<1x128xf32>
    tpu.vector_store %arg12[%477, %c0_213], %476 {strides = array<i32>} : memref<8x128xf32, #tpu.memory_space<vmem>>, vector<1x128xf32>,
    %c0_214 = arith.constant 0 : index
    %c0_215 = arith.constant 0 : index
    %479 = vector.load %arg3[%c0_214, %c0_215] : memref<128x32xf32, #tpu.memory_space<vmem>>, vector<128x32xf32>
    %cst_216 = arith.constant dense<0.000000e+00> : vector<1x32xf32>
    %480 = tpu.matmul %476, %479, %cst_216 {dimension_numbers = #tpu.dot_dimension_numbers<[1], [0], [0], [1], [0, 0, 1, 1], [], []>} : vector<1x128xf32>, vector<128x32xf32>, vector<1x32xf32> -> vector<1x32xf32>
    %481 = vector.extract_strided_slice %460 {offsets = [0, 128], sizes = [1, 32], strides = [1, 1]} : vector<1x160xf32> to vector<1x32xf32>
    %c0_217 = arith.constant 0 : index
    %c0_218 = arith.constant 0 : index
    %482 = vector.load %arg6[%c0_217, %c0_218] : memref<32x32xf32, #tpu.memory_space<vmem>>, vector<32x32xf32>
    %cst_219 = arith.constant dense<0.000000e+00> : vector<1x32xf32>
    %483 = tpu.matmul %480, %482, %cst_219 {dimension_numbers = #tpu.dot_dimension_numbers<[1], [0], [0], [1], [0, 0, 1, 1], [], []>} : vector<1x32xf32>, vector<32x32xf32>, vector<1x32xf32> -> vector<1x32xf32>
    %484 = arith.addf %481, %483 : vector<1x32xf32>
    %c0_220 = arith.constant 0 : index
    %c0_221 = arith.constant 0 : index
    %485 = vector.load %arg7[%c0_220, %c0_221] : memref<1x32xf32, #tpu.memory_space<vmem>>, vector<1x32xf32>
    %486 = arith.addf %484, %485 : vector<1x32xf32>
    %cst_222 = arith.constant 0.000000e+00 : f32
    %487 = vector.broadcast %cst_222 : f32 to vector<1x32xf32>
    %488 = arith.maximumf %486, %487 : vector<1x32xf32>
    %c0_223 = arith.constant 0 : index
    %c0_224 = arith.constant 0 : index
    %489 = vector.load %arg8[%c0_223, %c0_224] : memref<32x96xf32, #tpu.memory_space<vmem>>, vector<32x96xf32>
    %cst_225 = arith.constant dense<0.000000e+00> : vector<1x96xf32>
    %490 = tpu.matmul %488, %489, %cst_225 {dimension_numbers = #tpu.dot_dimension_numbers<[1], [0], [0], [1], [0, 0, 1, 1], [], []>} : vector<1x32xf32>, vector<32x96xf32>, vector<1x96xf32> -> vector<1x96xf32>
    %c0_226 = arith.constant 0 : index
    %c0_227 = arith.constant 0 : index
    %491 = vector.load %arg9[%c0_226, %c0_227] : memref<1x96xf32, #tpu.memory_space<vmem>>, vector<1x96xf32>
    %492 = arith.addf %490, %491 : vector<1x96xf32>
    %493 = vector.extract_strided_slice %462 {offsets = [0, 128], sizes = [1, 96], strides = [1, 1]} : vector<1x224xf32> to vector<1x96xf32>
    %c0_228 = arith.constant 0 : index
    %c0_229 = arith.constant 0 : index
    %494 = vector.load %arg10[%c0_228, %c0_229] : memref<1x96xf32, #tpu.memory_space<vmem>>, vector<1x96xf32>
    %495 = arith.addf %493, %494 : vector<1x96xf32>
    %496 = vector.extract_strided_slice %492 {offsets = [0, 0], sizes = [1, 32], strides = [1, 1]} : vector<1x96xf32> to vector<1x32xf32>
    %497 = vector.extract_strided_slice %495 {offsets = [0, 0], sizes = [1, 32], strides = [1, 1]} : vector<1x96xf32> to vector<1x32xf32>
    %498 = arith.addf %496, %497 : vector<1x32xf32>
    %499 = arith.negf %498 : vector<1x32xf32>
    %500 = math.exp %499 : vector<1x32xf32>
    %cst_230 = arith.constant 1.000000e+00 : f32
    %501 = vector.broadcast %cst_230 : f32 to vector<1x32xf32>
    %502 = arith.addf %501, %500 : vector<1x32xf32>
    %503 = arith.divf %501, %502 : vector<1x32xf32>
    %504 = vector.extract_strided_slice %492 {offsets = [0, 32], sizes = [1, 32], strides = [1, 1]} : vector<1x96xf32> to vector<1x32xf32>
    %505 = vector.extract_strided_slice %495 {offsets = [0, 32], sizes = [1, 32], strides = [1, 1]} : vector<1x96xf32> to vector<1x32xf32>
    %506 = arith.addf %504, %505 : vector<1x32xf32>
    %507 = arith.negf %506 : vector<1x32xf32>
    %508 = math.exp %507 : vector<1x32xf32>
    %cst_231 = arith.constant 1.000000e+00 : f32
    %509 = vector.broadcast %cst_231 : f32 to vector<1x32xf32>
    %510 = arith.addf %509, %508 : vector<1x32xf32>
    %511 = arith.divf %509, %510 : vector<1x32xf32>
    %512 = vector.extract_strided_slice %492 {offsets = [0, 64], sizes = [1, 32], strides = [1, 1]} : vector<1x96xf32> to vector<1x32xf32>
    %513 = vector.extract_strided_slice %495 {offsets = [0, 64], sizes = [1, 32], strides = [1, 1]} : vector<1x96xf32> to vector<1x32xf32>
    %514 = arith.mulf %503, %513 : vector<1x32xf32>
    %515 = arith.addf %512, %514 : vector<1x32xf32>
    %516 = math.tanh %515 : vector<1x32xf32>
    %cst_232 = arith.constant 1.000000e+00 : f32
    %517 = vector.broadcast %cst_232 : f32 to vector<1x32xf32>
    %518 = arith.subf %517, %511 : vector<1x32xf32>
    %519 = arith.mulf %518, %516 : vector<1x32xf32>
    %520 = arith.mulf %511, %456 : vector<1x32xf32>
    %521 = arith.addf %519, %520 : vector<1x32xf32>
    %522 = arith.index_cast %c7_i32 : i32 to index
    %c0_233 = arith.constant 0 : index
    %523 = vector.load %arg11[%522, %c0_233] : memref<8x32xf32, #tpu.memory_space<vmem>>, vector<1x32xf32>
    tpu.vector_store %arg11[%522, %c0_233], %521 {strides = array<i32>} : memref<8x32xf32, #tpu.memory_space<vmem>>, vector<1x32xf32>,
    %c8_i32 = arith.constant 8 : i32
    %c0_234 = arith.constant 0 : index
    %c0_235 = arith.constant 0 : index
    %524 = vector.load %arg13[%c0_234, %c0_235] : memref<1x32xf32, #tpu.memory_space<vmem>>, vector<1x32xf32>
    tpu.vector_store %arg13[%c0_234, %c0_235], %521 {strides = array<i32>} : memref<1x32xf32, #tpu.memory_space<vmem>>, vector<1x32xf32>,
    return
  }
  func.func @transform_0(%arg0: i32) -> (i32, i32) {
    %c0_i32 = arith.constant 0 : i32
    %c0_i32_0 = arith.constant 0 : i32
    return %arg0, %c0_i32 : i32, i32
  }
  func.func @transform_1(%arg0: i32) -> (i32, i32) {
    %c0_i32 = arith.constant 0 : i32
    %c0_i32_0 = arith.constant 0 : i32
    %c0_i32_1 = arith.constant 0 : i32
    return %c0_i32, %c0_i32_0 : i32, i32
  }
  func.func @transform_2(%arg0: i32) -> (i32, i32) {
    %c0_i32 = arith.constant 0 : i32
    %c0_i32_0 = arith.constant 0 : i32
    %c0_i32_1 = arith.constant 0 : i32
    return %c0_i32, %c0_i32_0 : i32, i32
  }
  func.func @transform_3(%arg0: i32) -> (i32, i32) {
    %c0_i32 = arith.constant 0 : i32
    %c0_i32_0 = arith.constant 0 : i32
    %c0_i32_1 = arith.constant 0 : i32
    return %c0_i32, %c0_i32_0 : i32, i32
  }
  func.func @transform_4(%arg0: i32) -> (i32, i32) {
    %c0_i32 = arith.constant 0 : i32
    %c0_i32_0 = arith.constant 0 : i32
    %c0_i32_1 = arith.constant 0 : i32
    return %c0_i32, %c0_i32_0 : i32, i32
  }
  func.func @transform_5(%arg0: i32) -> (i32, i32) {
    %c0_i32 = arith.constant 0 : i32
    %c0_i32_0 = arith.constant 0 : i32
    %c0_i32_1 = arith.constant 0 : i32
    return %c0_i32, %c0_i32_0 : i32, i32
  }
  func.func @transform_6(%arg0: i32) -> (i32, i32) {
    %c0_i32 = arith.constant 0 : i32
    %c0_i32_0 = arith.constant 0 : i32
    %c0_i32_1 = arith.constant 0 : i32
    return %c0_i32, %c0_i32_0 : i32, i32
  }
  func.func @transform_7(%arg0: i32) -> (i32, i32) {
    %c0_i32 = arith.constant 0 : i32
    %c0_i32_0 = arith.constant 0 : i32
    %c0_i32_1 = arith.constant 0 : i32
    return %c0_i32, %c0_i32_0 : i32, i32
  }
  func.func @transform_8(%arg0: i32) -> (i32, i32) {
    %c0_i32 = arith.constant 0 : i32
    %c0_i32_0 = arith.constant 0 : i32
    %c0_i32_1 = arith.constant 0 : i32
    return %c0_i32, %c0_i32_0 : i32, i32
  }
  func.func @transform_9(%arg0: i32) -> (i32, i32) {
    %c0_i32 = arith.constant 0 : i32
    %c0_i32_0 = arith.constant 0 : i32
    %c0_i32_1 = arith.constant 0 : i32
    return %c0_i32, %c0_i32_0 : i32, i32
  }
  func.func @transform_10(%arg0: i32) -> (i32, i32) {
    %c0_i32 = arith.constant 0 : i32
    %c0_i32_0 = arith.constant 0 : i32
    return %arg0, %c0_i32 : i32, i32
  }
  func.func @transform_11(%arg0: i32) -> (i32, i32) {
    %c0_i32 = arith.constant 0 : i32
    %c0_i32_0 = arith.constant 0 : i32
    return %arg0, %c0_i32 : i32, i32
  }
}

</mosaic_0001>

<bundles_post_ra>
// kernel: tpu_custom_call.1
= control target key start
LH: loop header
LB: loop body
LE: loop exit
PB: predicated region body
PF: predicated region fallthrough
CT: control target
= control target key end

     0   :  { %s5871_s0 = inlined_call_operand.vmem [shape: f32[16,160], index: 0, kind: input, shape index: {}]   ;;  %s5872_s1 = inlined_call_operand.vmem [shape: f32[1,32], index: 1, kind: input, shape index: {}]   ;;  %s5873_s2 = inlined_call_operand.vmem [shape: f32[128,32], index: 2, kind: input, shape index: {}]   ;;  %s5874_s3 = inlined_call_operand.vmem [shape: f32[32,224], index: 3, kind: input, shape index: {}]   ;;  %s5875_s4 = inlined_call_operand.vmem [shape: f32[1,128], index: 4, kind: input, shape index: {}]   ;;  %s5876_s5 = inlined_call_operand.vmem [shape: f32[32,32], index: 5, kind: input, shape index: {}]   ;;  %s5877_s6 = inlined_call_operand.vmem [shape: f32[1,32], index: 6, kind: input, shape index: {}]   ;;  %s5878_s7 = inlined_call_operand.vmem [shape: f32[32,96], index: 7, kind: input, shape index: {}]   ;;  %s5879_s8 = inlined_call_operand.vmem [shape: f32[1,96], index: 8, kind: input, shape index: {}]   ;;  %s5880_s9 = inlined_call_operand.vmem [shape: f32[1,96], index: 9, kind: input, shape index: {}]   ;;  %s5881_s10 = inlined_call_operand.hbm [shape: f32[16,32], index: 10, kind: output, shape index: {0}]   ;;  %s5882_s11 = inlined_call_operand.hbm [shape: f32[16,128], index: 11, kind: output, shape index: {1}]  }
   0x1   :  { %5889 = sst [smem:[#allocation11_spill]] %s5871_s0 }
   0x2   :  { %5890 = sst [smem:[#allocation12_spill]] %s5872_s1 }
   0x3   :  { %17 = vsyncpa [#allocation4], 0 }
   0x4   :  { %19 = vsyncpa [#allocation4 + $0x1], 0 }
   0x5   :  { %20 = vsyncpa [#allocation6], 0 }
   0x6   :  { %22 = vsyncpa [#allocation6 + $0x1], 0  ;;  %s4943_s17 = smov 0   ;;  %s4945_s18 = smov 0  }
   0x7   :  { %s4947_s19 = smov 0   ;;  %s4949_s20 = smov 0  }
   0x8 LB: > { %5891 = sst [smem:[#allocation9_spill]] %s4869_s19  ;;  %s4964_s21 = sadd.s32 4294967295, %s4873_s20   ;;  %s4873_s20 = sphi %s4949_s20, %s5904_s20   ;;  %s4869_s19 = sphi %s4947_s19, %s5901_s19   ;;  %s4865_s18 = sphi %s4945_s18, %s5903_s18   ;;  %s4861_s17 = sphi %s4943_s17, %s5902_s17  }
   0x9   : > { %s3570_s22 = sadd.s32 4294967294, %s4873_s20   ;;  %s4968_s23 = sadd.s32 1, %s4873_s20  }
   0xa   : > { %s250_s24 = sadd.s32 1, %s4869_s19  ;;  %s247_s25 = ssub.s32 %s4873_s20, %s4968_s23 }
   0xb   : > { %p260_p0 = scmp.ne.s32.totalorder %s4869_s19, %s4865_s18  ;;  %p248_p1 = scmp.eq.s32.totalorder %s247_s25, 0 }
   0xc   : > { %p261_p2 = scmp.eq.s32.totalorder %s4964_s21, 1  ;;  %p266_p3 = scmp.ne.s32.totalorder %s4865_s18, %s4861_s17 }
   0xd   : > { %p267_p4 = scmp.eq.s32.totalorder %s3570_s22, 1  ;;  %p3573_p7 = scmp.ge.s32.totalorder %s4873_s20, 1 }
   0xe   : > { %s4979_s26 = scalar_select %p248_p1, %s4869_s19, %s250_s24  }
   0xf   : > { %p4981_p5 = por %p261_p2, %p260_p0  ;;  %p4985_p6 = por %p267_p4, %p266_p3 }
  0x10   : > { %5892 = sst [smem:[#allocation10_spill]] %s4979_s26  ;;  %p346_p8 = scmp.lt.s32.totalorder %s4873_s20, 3 }
  0x12   : > { %p347_p9 = pnand %p3573_p7, %p346_p8 }
  0x13   : > { %s4992_s29 = sand.u32 (!%p347_p9), 1, %s4865_s18   ;;  %p391_p10 = scmp.lt.s32.totalorder (!%p347_p9), %s4964_s21, 1 }
  0x14   : > { %350 = sbr.rel (%p347_p9) target bundleno = 12589 (0x312d), region = 60  ;;  %s3574_s30 = sshll.u32 (!%p347_p9), %s4992_s29, 3 }
  0x15   : > { %s5895_s0 = sld [smem:[#allocation11_spill]] (!%p347_p9)  ;;  %s5002_s22 = scalar_lea.vmem (!%p347_p9), [#allocation3], %s3574_s30 }
  0x16   : > { %s5004_s24 = scalar_lea.vmem (!%p347_p9), [#allocation5], %s3574_s30  ;;  %p3578_p11 = scmp.ne.s32.totalorder (!%p347_p9), %s4964_s21, 0 }
  0x1b   : > { %s392_s12 = scalar_select %p391_p10, %s4964_s21, 1 }
  0x1c   : > { %399 = sbr.rel (%p3578_p11) target bundleno = 36 (0x24), region = 64  ;;  %s5896_s1 = sld [smem:[#allocation12_spill]] (!%p3578_p11)  ;;  %vm401_vm0 = vcmask (!%p3578_p11), 253952  }
  0x1d   : > { %s3624_s13 = sshll.u32 %s392_s12, 4 }
  0x1e   : > { %s5000_s16 = scalar_lea.vmem %s5895_s0, %s3624_s13 }
  0x22   : > { %v400_v0 = vld [vmem:[%s5896_s1] sm:$0x1] (!%p3578_p11) }
  0x23   : > { %402 = vst.msk [vmem:[#allocation2] sm:$0x1] %vm401_vm0, %v400_v0 }
  0x24 PF: > { %v406_v1 = vld [vmem:[%s5874_s3 + $0x8] sm:$0xff]  ;;  %v408_v2 = vld [vmem:[%s5874_s3 + $0x18] sm:$0xff]  ;;  %v405_v3 = vld [vmem:[%s5874_s3] sm:$0xff]  ;;  %v4875_v8 = vmov 0.0   ;;  %vm413_vm1 = vcmask 261120   ;;  %vm491_vm2 = vcmask 1040384  }
  0x25   : > { %v5019_v4 = vpack.c.bf16 %v408_v2, %v406_v1  ;;  %v407_v5 = vld [vmem:[%s5874_s3 + $0x10] sm:$0xff]  ;;  %v410_v6 = vld [vmem:[%s5874_s3 + $0x28] sm:$0xff]  ;;  %v412_v7 = vld [vmem:[%s5874_s3 + $0x38] sm:$0xff]  ;;  %481 = vmatprep.mubr.f32.mxu1 %v4875_v8  ;;  %s5884_s19 = smov 64   ;;  %v4877_v27 = vmov 0.0|0.0   ;;  %vm4878_vm3 = vmmov 0  }
  0x26   : > { %v5031_v9 = vpack.c.bf16 %v407_v5, %v405_v3  ;;  %v5033_v10 = vpack.c.bf16 %v412_v7, %v410_v6  ;;  %v409_v11 = vld [vmem:[%s5874_s3 + $0x20] sm:$0xff]  ;;  %v411_v12 = vld [vmem:[%s5874_s3 + $0x30] sm:$0xff]  ;;  %v505_v25 = vld [vmem:[%s5873_s2 + $0x8] sm:$0xff]  ;;  %4329 = vmatprep.subr.bf16.mxu0 %v4877_v27  ;;  %3884 = vmatprep.mubr.msk.f32.mxu0 %vm4878_vm3, %v4875_v8  ;;  %s4879_s26 = smov 32   ;;  %s5886_s25 = smov 96   ;;  %vm791_vm4 = vcmask 253952  }
  0x27   : > { %4298 = vmatprep.subr.bf16.mxu1 %v5019_v4  ;;  %v5043_v13 = vpack.c.bf16 %v411_v12, %v409_v11  ;;  %v5052_v15 = vld [vmem:[%s5000_s16] ss:$8 sm:$0x3]  ;;  %v506_v26 = vld [vmem:[%s5873_s2 + $0x10] sm:$0xff]  ;;  %v507_v29 = vld [vmem:[%s5873_s2 + $0x18] sm:$0xff]  ;;  %s5898_s13 = smov 64  }
  0x28   : > { %4300 = vmatpush1.bf16.msra.mxu1 %v5031_v9  ;;  %v752_v16 = vld [vmem:[%s5880_s9] sm:$0x1]  ;;  %v5083_v30 = vpack.c.bf16 %v507_v29, %v506_v26  ;;  %v509_v32 = vld [vmem:[%s5873_s2 + $0x28] sm:$0xff]  ;;  %v510_v34 = vld [vmem:[%s5873_s2 + $0x30] sm:$0xff]  ;;  %v668_v11 = vrot.slane %v5052_v15, 1  ;;  %s5888_s1 = sshll.u32 %s4964_s21, 7 }
  0x29   : > { %4302 = vmatprep.subr.bf16.mxu1 %v5033_v10  ;;  %v489_v18 = vld [vmem:[%s5875_s4] sm:$0x1]  ;;  %v511_v35 = vld [vmem:[%s5873_s2 + $0x38] sm:$0xff]  ;;  %v513_v38 = vld [vmem:[%s5873_s2 + $0x48] sm:$0xff]  ;;  %s3479_s12 = sshll.u32 %s5004_s24, 4  ;;  %s3480_s12 = int_to_ptr.vmem [resolvable:$true] %s3479_s12 }
  0x2a   : > { %v5047_v14 = vld [vmem:[#allocation2] sm:$0x1]  ;;  %v5103_v36 = vpack.c.bf16 %v511_v35, %v510_v34  ;;  %v514_v45 = vld [vmem:[%s5873_s2 + $0x50] sm:$0xff]  ;;  %v515_v46 = vld [vmem:[%s5873_s2 + $0x58] sm:$0xff]  ;;  %s4779_s14 = scalar_lea.vmem %s3480_s12, 128 }
  0x2b   : > { %v504_v24 = vld [vmem:[%s5873_s2] sm:$0xff]  ;;  %v5125_v47 = vpack.c.bf16 %v515_v46, %v514_v45  ;;  %v517_v49 = vld [vmem:[%s5873_s2 + $0x68] sm:$0xff]  ;;  %v518_v51 = vld [vmem:[%s5873_s2 + $0x70] sm:$0xff]  ;;  %p4780_p12 = scmp.ne.s32.totalorder %s3480_s12, %s4779_s14 }
  0x2c   : > { %4304 = vmatpush1.bf16.msra.mxu1 %v5043_v13  ;;  %v5076_v28 = vpack.c.bf16 %v505_v25, %v504_v24  ;;  %v508_v31 = vld [vmem:[%s5873_s2 + $0x20] sm:$0xff]  ;;  %v519_v52 = vld [vmem:[%s5873_s2 + $0x78] sm:$0xff]  ;;  %v591_v55 = vld [vmem:[%s5876_s5 + $0x8] sm:$0xff] }
  0x2d   : > { %4305 = vmatprep.subr.bf16.mxu1 %v4877_v27  ;;  %v5093_v33 = vpack.c.bf16 %v509_v32, %v508_v31  ;;  %v512_v37 = vld [vmem:[%s5873_s2 + $0x40] sm:$0xff]  ;;  %v5148_v53 = vpack.c.bf16 %v519_v52, %v518_v51  ;;  %v592_v56 = vld [vmem:[%s5876_s5 + $0x10] sm:$0xff]  ;;  %v593_v58 = vld [vmem:[%s5876_s5 + $0x18] sm:$0xff]  ;;  %v778_v32 = vlaneseq  ;;  %p4781_p13 = pnand %p4780_p12, %p4981_p5 }
  0x2e   : > { %v5113_v39 = vpack.c.bf16 %v513_v38, %v512_v37  ;;  %v516_v48 = vld [vmem:[%s5873_s2 + $0x60] sm:$0xff]  ;;  %v5168_v59 = vpack.c.bf16 %v593_v58, %v592_v56  ;;  %v675_v2 = vld [vmem:[%s5878_s7 + $0x8] sm:$0xff]  ;;  %v676_v5 = vld [vmem:[%s5878_s7 + $0x10] sm:$0xff] }
  0x2f   : > { %3579 = vmatmul.mubr.msk.f32.vlgmr.msra.gmra.mrb[0].mxu1 %vm413_vm1, %v5047_v14  ;;  %v5138_v50 = vpack.c.bf16 %v517_v49, %v516_v48  ;;  %v590_v54 = vld [vmem:[%s5876_s5] sm:$0xff]  ;;  %v677_v6 = vld [vmem:[%s5878_s7 + $0x18] sm:$0xff]  ;;  %v779_v34 = vshrl.u32 %v778_v32, 7  ;;  %p4782_p0 = pneg %p4781_p13 }
  0x30   : > { %4307 = vmatpush3.bf16.msra.mxu1 %v5076_v28  ;;  %3873 = vmatprep.mubr.msk.f32.mxu1 %vm4878_vm3, %v4875_v8  ;;  %v5162_v57 = vpack.c.bf16 %v591_v55, %v590_v54  ;;  %v674_v1 = vld [vmem:[%s5878_s7] sm:$0xff]  ;;  %v5199_v7 = vpack.c.bf16 %v677_v6, %v676_v5 }
  0x31   : > { %4308 = vmatprep.subr.bf16.mxu1 %v4877_v27  ;;  %v5189_v3 = vpack.c.bf16 %v675_v2, %v674_v1  ;;  %v780_v35 = vsub.s32 0, %v779_v34  ;;  %v3583_v52 = vld [vmem:[%s5000_s16 + $0x1] ss:$8 sm:$0x3]  ;;  %v877_v55 = vld [vmem:[%s5875_s4] sm:$0x1] }
  0x32   : > { %4331 = vmatpush3.bf16.msra.mxu0 %v5162_v57 }
  0x33   : > { %4332 = vmatprep.subr.bf16.mxu0 %v4877_v27 }
  0x34   : > { %4310 = vmatpush3.bf16.msra.mxu1 %v5083_v30 }
  0x35   : > { %4311 = vmatprep.subr.bf16.mxu1 %v4877_v27 }
  0x36   : > { %4334 = vmatpush3.bf16.msra.mxu0 %v5168_v59 }
  0x37   : > { %4335 = vmatprep.subr.bf16.mxu0 %v4877_v27 }
  0x38   : > { %4313 = vmatpush3.bf16.msra.mxu1 %v5093_v33 }
  0x39   : > { %4314 = vmatprep.subr.bf16.mxu1 %v4877_v27 }
  0x3c   : > { %4316 = vmatpush3.bf16.msra.mxu1 %v5103_v36 }
  0x3d   : > { %4317 = vmatprep.subr.bf16.mxu1 %v4877_v27 }
  0x40   : > { %4319 = vmatpush3.bf16.msra.mxu1 %v5113_v39 }
  0x41   : > { %4320 = vmatprep.subr.bf16.mxu1 %v4877_v27 }
  0x44   : > { %4322 = vmatpush3.bf16.msra.mxu1 %v5125_v47 }
  0x45   : > { %4323 = vmatprep.subr.bf16.mxu1 %v4877_v27 }
  0x48   : > { %4325 = vmatpush3.bf16.msra.mxu1 %v5138_v50 }
  0x49   : > { %4326 = vmatprep.subr.bf16.mxu1 %v4877_v27 }
  0x4c   : > { %4328 = vmatpush3.bf16.msra.mxu1 %v5148_v53 }
  0x4d   : > { %4373 = vmatprep.subr.bf16.mxu1 %v4877_v27 }
 0x102   : > { %v483_v17 = vpop.f32.mrb[0].mxu1 }
 0x103   : > { %v488_v19 = vadd.f32 %v483_v17, %v5052_v15  ;;  %v485_v20 = vpop.f32.mrb[1].mxu1  ;;  %v678_v15 = vld [vmem:[%s5879_s8] sm:$0x1] }
 0x104   : > { %v5061_v21 = vadd.f32 %v752_v16, %v485_v20  ;;  %v671_v16 = vld [vmem:[%s5877_s6] sm:$0x1] }
 0x105   : > { %v490_v22 = vadd.f32 %v489_v18, %v488_v19 }
 0x106   : > { %762 = vrot.lane.b32.xlu1 %v5061_v21, %s5884_s19 }
 0x107   : > { %v492_v23 = vsel %vm491_vm2, %v490_v22, -inf }
 0x108   : > { %493 = vmax.xlane.f32.xlu0 %v492_v23 }
 0x178   : > { %v763_v38 = vpop.permute.xlu1 %762 }
 0x195   : > { %v494_v40 = vpop.xlane.xlu0 %493 }
 0x196   : > { %v495_v41 = vsub.f32 %v490_v22, %v494_v40 }
 0x198   : > { %v496_v42 = vmul.f32 1.442695, %v495_v41  ;;  %v781_v41 = vrot.slane %v5047_v14, %v780_v35 }
 0x19a   : > { %4699 = vpow2.f32 %v496_v42 }
 0x1a4   : > { %v4700_v43 = vpop.eup %4699 }
 0x1a5   : > { %v498_v44 = vsel %vm491_vm2, %v4700_v43, 0.0 }
 0x1a6   : > { %499 = vadd.xlane.f32.xlu0 %v498_v44 }
 0x233   : > { %v500_v60 = vpop.xlane.xlu0 %499 }
 0x234   : > { %4701 = vrcp.f32 %v500_v60 }
 0x23e   : > { %v4702_v61 = vpop.eup %4701 }
 0x23f   : > { %v502_v62 = vmul.f32 %v4702_v61, %v4700_v43 }
 0x241   : > { %503 = vst [vmem:[%s5004_s24] sm:$0x1] %v502_v62  ;;  %3874 = vmatmul.mubr.f32.vlgmr.msra.gmra.mrb[2].mxu1 %v502_v62  ;;  %v1139_v62 = vld [vmem:[%s5880_s9] sm:$0x1] }
 0x242   : > { %4375 = vmatpush3.bf16.msra.mxu1 %v5162_v57  ;;  %3941 = vmatprep.mubr.msk.f32.mxu1 %vm4878_vm3, %v4875_v8 }
 0x243   : > { %4376 = vmatprep.subr.bf16.mxu1 %v4877_v27 }
 0x246   : > { %4378 = vmatpush3.bf16.msra.mxu1 %v5168_v59 }
 0x247   : > { %4379 = vmatprep.subr.bf16.mxu1 %v4877_v27 }
 0x314   : > { %v586_v63 = vpop.f32.mrb[2].mxu1 }
 0x315   : > { %v3875_v0 = vpop.f32.mrb[3].mxu1  ;;  %3885 = vmatmul.mubr.msk.f32.vlgmr.msra.gmra.mrb[0].mxu0 %vm413_vm1, %v586_v63 }
 0x316   : > { %3895 = vmatprep.mubr.msk.f32.mxu0 %vm4878_vm3, %v4875_v8  ;;  %4337 = vmatpush3.bf16.msra.mxu0 %v5189_v3 }
 0x317   : > { %4338 = vmatprep.subr.bf16.mxu0 %v4877_v27 }
 0x31a   : > { %4340 = vmatpush3.bf16.msra.mxu0 %v5199_v7 }
 0x31b   : > { %4342 = vmatprep.subr.bf16.mxu0 %v5019_v4 }
 0x3e8   : > { %v663_v12 = vpop.f32.mrb[0].mxu0 }
 0x3e9   : > { %v670_v17 = vadd.f32 %v668_v11, %v663_v12  ;;  %v3886_v18 = vpop.f32.mrb[1].mxu0 }
 0x3eb   : > { %v672_v19 = vadd.f32 %v671_v16, %v670_v17 }
 0x3ed   : > { %v673_v20 = vmax.f32 %v672_v19, 0.0  ;;  %v1055_v19 = vrot.slane %v3583_v52, 1 }
 0x3ef   : > { %3896 = vmatmul.mubr.msk.f32.vlgmr.msra.gmra.mrb[2].mxu0 %vm413_vm1, %v673_v20 }
 0x3f0   : > { %4344 = vmatpush1.bf16.msra.mxu0 %v5031_v9  ;;  %869 = vmatprep.mubr.f32.mxu0 %v4875_v8 }
 0x3f1   : > { %4346 = vmatprep.subr.bf16.mxu0 %v5033_v10 }
 0x3f4   : > { %4348 = vmatpush1.bf16.msra.mxu0 %v5043_v13 }
 0x3f5   : > { %4349 = vmatprep.subr.bf16.mxu0 %v4877_v27 }
 0x4c2   : > { %v748_v22 = vpop.f32.mrb[2].mxu0 }
 0x4c3   : > { %v749_v23 = vadd.f32 %v748_v22, %v678_v15  ;;  %v3897_v24 = vpop.f32.mrb[3].mxu0  ;;  %v1058_v15 = vld [vmem:[%s5877_s6] sm:$0x1] }
 0x4c5   : > { %v754_v25 = vadd.f32 %v5061_v21, %v749_v23 }
 0x4c7   : > { %v3582_v26 = vmul.f32 -1.442695, %v754_v25 }
 0x4c9   : > { %4703 = vpow2.f32 %v3582_v26  ;;  %v1065_v26 = vld [vmem:[%s5879_s8] sm:$0x1] }
 0x4d3   : > { %v4704_v29 = vpop.eup %4703 }
 0x4d4   : > { %v758_v31 = vadd.f32 1.0, %v4704_v29 }
 0x4d6   : > { %4705 = vrcp.f32 %v758_v31 }
 0x4e0   : > { %v4706_v37 = vpop.eup %4705 }
 0x4e1   : > { %v765_v40 = vmul.f32 %v4706_v37, %v763_v38  ;;  %v772_v45 = vsub.f32 1.0, %v4706_v37 }
 0x4e3   : > { %767 = vrot.lane.b32.xlu1 %v765_v40, %s5884_s19 }
 0x4e7   : > { %782 = vrot.lane.b32.xlu1 %v781_v41, %s4879_s26  ;;  %s5796_s26 = scalar_lea.hbm %s5882_s11, %s5888_s1 }
 0x555   : > { %v768_v42 = vpop.permute.xlu1 %767 }
 0x556   : > { %v770_v21 = vadd.f32 %v768_v42, %v749_v23 }
 0x558   : > { %4707 = vtanh.f32 %v770_v21 }
 0x559   : > { %v783_v44 = vpop.permute.xlu1 %782 }
 0x55a   : > { %v785_v48 = vmul.f32 %v4706_v37, %v783_v44 }
 0x562   : > { %v4708_v43 = vpop.eup %4707 }
 0x563   : > { %774 = vrot.lane.b32.xlu0 %v4708_v43, %s5886_s25 }
 0x5d5   : > { %v775_v46 = vpop.permute.xlu0 %774 }
 0x5d6   : > { %v777_v49 = vmul.f32 %v775_v46, %v772_v45 }
 0x5d8   : > { %v5220_v51 = vadd.f32 %v785_v48, %v777_v49 }
 0x5da   : > { %788 = vrot.lane.b32.xlu1 %v5220_v51, %s5886_s25 }
 0x64c   : > { %v789_v14 = vpop.permute.xlu1 %788 }
 0x64d   : > { %792 = vst.msk [vmem:[%s5002_s22] sm:$0x1] %vm791_vm4, %v789_v14  ;;  %3584 = vmatmul.mubr.msk.f32.vlgmr.msra.gmra.mrb[4].mxu0 %vm413_vm1, %v789_v14 }
 0x64e   : > { %4351 = vmatpush3.bf16.msra.mxu0 %v5076_v28  ;;  %3930 = vmatprep.mubr.msk.f32.mxu0 %vm4878_vm3, %v4875_v8 }
 0x64f   : > { %4352 = vmatprep.subr.bf16.mxu0 %v4877_v27 }
 0x652   : > { %4354 = vmatpush3.bf16.msra.mxu0 %v5083_v30 }
 0x653   : > { %4355 = vmatprep.subr.bf16.mxu0 %v4877_v27 }
 0x656   : > { %4357 = vmatpush3.bf16.msra.mxu0 %v5093_v33 }
 0x657   : > { %4358 = vmatprep.subr.bf16.mxu0 %v4877_v27 }
 0x65a   : > { %4360 = vmatpush3.bf16.msra.mxu0 %v5103_v36 }
 0x65b   : > { %4361 = vmatprep.subr.bf16.mxu0 %v4877_v27 }
 0x65e   : > { %4363 = vmatpush3.bf16.msra.mxu0 %v5113_v39 }
 0x65f   : > { %4364 = vmatprep.subr.bf16.mxu0 %v4877_v27 }
 0x662   : > { %4366 = vmatpush3.bf16.msra.mxu0 %v5125_v47 }
 0x663   : > { %4367 = vmatprep.subr.bf16.mxu0 %v4877_v27 }
 0x666   : > { %4369 = vmatpush3.bf16.msra.mxu0 %v5138_v50 }
 0x667   : > { %4370 = vmatprep.subr.bf16.mxu0 %v4877_v27 }
 0x66a   : > { %4372 = vmatpush3.bf16.msra.mxu0 %v5148_v53 }
 0x66b   : > { %4417 = vmatprep.subr.bf16.mxu0 %v4877_v27 }
 0x720   : > { %v871_v54 = vpop.f32.mrb[4].mxu0 }
 0x721   : > { %v876_v56 = vadd.f32 %v3583_v52, %v871_v54  ;;  %v873_v58 = vpop.f32.mrb[5].mxu0 }
 0x722   : > { %v1140_v63 = vadd.f32 %v1139_v62, %v873_v58  ;;  %v1518_v62 = vld [vmem:[%s5880_s9] sm:$0x1] }
 0x723   : > { %v878_v60 = vadd.f32 %v877_v55, %v876_v56  ;;  %v1256_v55 = vld [vmem:[%s5875_s4] sm:$0x1] }
 0x725   : > { %v879_v61 = vsel %vm491_vm2, %v878_v60, -inf }
 0x726   : > { %880 = vmax.xlane.f32.xlu1 %v879_v61 }
 0x737   : > { %1149 = vrot.lane.b32.xlu1 %v1140_v63, %s5884_s19 }
 0x7b3   : > { %v881_v0 = vpop.xlane.xlu1 %880 }
 0x7b4   : > { %v882_v1 = vsub.f32 %v878_v60, %v881_v0 }
 0x7b6   : > { %v883_v2 = vmul.f32 1.442695, %v882_v1 }
 0x7b7   : > { %v1150_v41 = vpop.permute.xlu1 %1149 }
 0x7b8   : > { %4709 = vpow2.f32 %v883_v2 }
 0x7c2   : > { %v4710_v5 = vpop.eup %4709 }
 0x7c3   : > { %v885_v6 = vsel %vm491_vm2, %v4710_v5, 0.0 }
 0x7c4   : > { %886 = vadd.xlane.f32.xlu0 %v885_v6 }
 0x851   : > { %v887_v11 = vpop.xlane.xlu0 %886 }
 0x852   : > { %4711 = vrcp.f32 %v887_v11 }
 0x85c   : > { %v4712_v12 = vpop.eup %4711 }
 0x85d   : > { %v889_v16 = vmul.f32 %v4712_v12, %v4710_v5 }
 0x85f   : > { %890 = vst [vmem:[%s5004_s24 + $0x1] sm:$0x1] %v889_v16  ;;  %3931 = vmatmul.mubr.f32.vlgmr.msra.gmra.mrb[6].mxu0 %v889_v16 }
 0x860   : > { %4419 = vmatpush3.bf16.msra.mxu0 %v5162_v57  ;;  %3998 = vmatprep.mubr.msk.f32.mxu0 %vm4878_vm3, %v4875_v8 }
 0x861   : > { %4420 = vmatprep.subr.bf16.mxu0 %v4877_v27 }
 0x864   : > { %4422 = vmatpush3.bf16.msra.mxu0 %v5168_v59 }
 0x865   : > { %4423 = vmatprep.subr.bf16.mxu0 %v4877_v27 }
 0x932   : > { %v973_v17 = vpop.f32.mrb[6].mxu0 }
 0x933   : > { %v3932_v18 = vpop.f32.mrb[7].mxu0  ;;  %3942 = vmatmul.mubr.msk.f32.vlgmr.msra.gmra.mrb[4].mxu1 %vm413_vm1, %v973_v17 }
 0x934   : > { %4381 = vmatpush3.bf16.msra.mxu1 %v5189_v3  ;;  %3952 = vmatprep.mubr.msk.f32.mxu1 %vm4878_vm3, %v4875_v8 }
 0x935   : > { %4382 = vmatprep.subr.bf16.mxu1 %v4877_v27 }
 0x938   : > { %4384 = vmatpush3.bf16.msra.mxu1 %v5199_v7 }
 0x939   : > { %4386 = vmatprep.subr.bf16.mxu1 %v5019_v4 }
 0xa06   : > { %v1050_v20 = vpop.f32.mrb[4].mxu1 }
 0xa07   : > { %v1057_v22 = vadd.f32 %v1055_v19, %v1050_v20  ;;  %v3943_v23 = vpop.f32.mrb[5].mxu1 }
 0xa09   : > { %v1059_v24 = vadd.f32 %v1058_v15, %v1057_v22 }
 0xa0b   : > { %v1060_v25 = vmax.f32 %v1059_v24, 0.0 }
 0xa0d   : > { %3953 = vmatmul.mubr.msk.f32.vlgmr.msra.gmra.mrb[6].mxu1 %vm413_vm1, %v1060_v25 }
 0xa0e   : > { %4388 = vmatpush1.bf16.msra.mxu1 %v5031_v9  ;;  %1248 = vmatprep.mubr.f32.mxu1 %v4875_v8 }
 0xa0f   : > { %4390 = vmatprep.subr.bf16.mxu1 %v5033_v10 }
 0xa12   : > { %4392 = vmatpush1.bf16.msra.mxu1 %v5043_v13 }
 0xa13   : > { %4393 = vmatprep.subr.bf16.mxu1 %v4877_v27 }
 0xae0   : > { %v1135_v29 = vpop.f32.mrb[6].mxu1 }
 0xae1   : > { %v1136_v31 = vadd.f32 %v1135_v29, %v1065_v26  ;;  %v3954_v32 = vpop.f32.mrb[7].mxu1 }
 0xae3   : > { %v1141_v34 = vadd.f32 %v1140_v63, %v1136_v31 }
 0xae5   : > { %v3587_v35 = vmul.f32 -1.442695, %v1141_v34 }
 0xae7   : > { %4713 = vpow2.f32 %v3587_v35 }
 0xaf1   : > { %v4714_v37 = vpop.eup %4713 }
 0xaf2   : > { %v1145_v38 = vadd.f32 1.0, %v4714_v37 }
 0xaf4   : > { %4715 = vrcp.f32 %v1145_v38 }
 0xafe   : > { %v4716_v40 = vpop.eup %4715 }
 0xaff   : > { %v1152_v42 = vmul.f32 %v4716_v40, %v1150_v41  ;;  %v1159_v45 = vsub.f32 1.0, %v4716_v40  ;;  %v1165_v48 = vmul.f32 %v4716_v40, %v5220_v51  ;;  %v3588_v51 = vld [vmem:[%s5000_s16 + $0x2] ss:$8 sm:$0x3] }
 0xb01   : > { %1154 = vrot.lane.b32.xlu0 %v1152_v42, %s5884_s19 }
 0xb73   : > { %v1155_v21 = vpop.permute.xlu0 %1154 }
 0xb74   : > { %v1157_v43 = vadd.f32 %v1155_v21, %v1136_v31 }
 0xb76   : > { %4717 = vtanh.f32 %v1157_v43 }
 0xb80   : > { %v4718_v44 = vpop.eup %4717 }
 0xb81   : > { %1161 = vrot.lane.b32.xlu1 %v4718_v44, %s5886_s25 }
 0xbf3   : > { %v1162_v46 = vpop.permute.xlu1 %1161 }
 0xbf4   : > { %v1164_v49 = vmul.f32 %v1162_v46, %v1159_v45 }
 0xbf6   : > { %v5284_v14 = vadd.f32 %v1165_v48, %v1164_v49 }
 0xbf8   : > { %1168 = vrot.lane.b32.xlu1 %v5284_v14, %s5886_s25 }
 0xc6a   : > { %v1169_v52 = vpop.permute.xlu1 %1168 }
 0xc6b   : > { %1171 = vst.msk [vmem:[%s5002_s22 + $0x1] sm:$0x1] %vm791_vm4, %v1169_v52  ;;  %3589 = vmatmul.mubr.msk.f32.vlgmr.msra.gmra.mrb[8].mxu1 %vm413_vm1, %v1169_v52 }
 0xc6c   : > { %4395 = vmatpush3.bf16.msra.mxu1 %v5076_v28  ;;  %3987 = vmatprep.mubr.msk.f32.mxu1 %vm4878_vm3, %v4875_v8 }
 0xc6d   : > { %4396 = vmatprep.subr.bf16.mxu1 %v4877_v27 }
 0xc70   : > { %4398 = vmatpush3.bf16.msra.mxu1 %v5083_v30 }
 0xc71   : > { %4399 = vmatprep.subr.bf16.mxu1 %v4877_v27 }
 0xc74   : > { %4401 = vmatpush3.bf16.msra.mxu1 %v5093_v33 }
 0xc75   : > { %4402 = vmatprep.subr.bf16.mxu1 %v4877_v27 }
 0xc78   : > { %4404 = vmatpush3.bf16.msra.mxu1 %v5103_v36 }
 0xc79   : > { %4405 = vmatprep.subr.bf16.mxu1 %v4877_v27 }
 0xc7c   : > { %4407 = vmatpush3.bf16.msra.mxu1 %v5113_v39 }
 0xc7d   : > { %4408 = vmatprep.subr.bf16.mxu1 %v4877_v27 }
 0xc80   : > { %4410 = vmatpush3.bf16.msra.mxu1 %v5125_v47 }
 0xc81   : > { %4411 = vmatprep.subr.bf16.mxu1 %v4877_v27 }
 0xc84   : > { %4413 = vmatpush3.bf16.msra.mxu1 %v5138_v50 }
 0xc85   : > { %4414 = vmatprep.subr.bf16.mxu1 %v4877_v27 }
 0xc88   : > { %4416 = vmatpush3.bf16.msra.mxu1 %v5148_v53 }
 0xc89   : > { %4461 = vmatprep.subr.bf16.mxu1 %v4877_v27 }
 0xd3e   : > { %v1250_v54 = vpop.f32.mrb[8].mxu1 }
 0xd3f   : > { %v1255_v56 = vadd.f32 %v3588_v51, %v1250_v54  ;;  %v1252_v58 = vpop.f32.mrb[9].mxu1 }
 0xd40   : > { %v1519_v63 = vadd.f32 %v1518_v62, %v1252_v58  ;;  %v1816_v62 = vld [vmem:[%s5877_s6] sm:$0x1] }
 0xd41   : > { %v1257_v60 = vadd.f32 %v1256_v55, %v1255_v56 }
 0xd43   : > { %v1258_v61 = vsel %vm491_vm2, %v1257_v60, -inf }
 0xd44   : > { %1259 = vmax.xlane.f32.xlu1 %v1258_v61 }
 0xd55   : > { %1528 = vrot.lane.b32.xlu1 %v1519_v63, %s5884_s19 }
 0xdd1   : > { %v1260_v0 = vpop.xlane.xlu1 %1259 }
 0xdd2   : > { %v1261_v1 = vsub.f32 %v1257_v60, %v1260_v0 }
 0xdd4   : > { %v1262_v2 = vmul.f32 1.442695, %v1261_v1 }
 0xdd6   : > { %4719 = vpow2.f32 %v1262_v2 }
 0xde0   : > { %v4720_v5 = vpop.eup %4719 }
 0xde1   : > { %v1264_v6 = vsel %vm491_vm2, %v4720_v5, 0.0 }
 0xde2   : > { %1265 = vadd.xlane.f32.xlu0 %v1264_v6 }
 0xe6f   : > { %v1266_v11 = vpop.xlane.xlu0 %1265 }
 0xe70   : > { %4721 = vrcp.f32 %v1266_v11 }
 0xe7a   : > { %v4722_v12 = vpop.eup %4721 }
 0xe7b   : > { %v1268_v16 = vmul.f32 %v4722_v12, %v4720_v5 }
 0xe7d   : > { %1269 = vst [vmem:[%s5004_s24 + $0x2] sm:$0x1] %v1268_v16  ;;  %3988 = vmatmul.mubr.f32.vlgmr.msra.gmra.mrb[10].mxu1 %v1268_v16 }
 0xe7e   : > { %4463 = vmatpush3.bf16.msra.mxu1 %v5162_v57  ;;  %4055 = vmatprep.mubr.msk.f32.mxu1 %vm4878_vm3, %v4875_v8  ;;  %v1434_v57 = vrot.slane %v3588_v51, 1 }
 0xe7f   : > { %4464 = vmatprep.subr.bf16.mxu1 %v4877_v27 }
 0xe82   : > { %4466 = vmatpush3.bf16.msra.mxu1 %v5168_v59  ;;  %v1437_v59 = vld [vmem:[%s5877_s6] sm:$0x1] }
 0xe83   : > { %4467 = vmatprep.subr.bf16.mxu1 %v4877_v27 }
 0xf50   : > { %v1352_v17 = vpop.f32.mrb[10].mxu1 }
 0xf51   : > { %v3989_v18 = vpop.f32.mrb[11].mxu1  ;;  %3999 = vmatmul.mubr.msk.f32.vlgmr.msra.gmra.mrb[8].mxu0 %vm413_vm1, %v1352_v17 }
 0xf52   : > { %4425 = vmatpush3.bf16.msra.mxu0 %v5189_v3  ;;  %4009 = vmatprep.mubr.msk.f32.mxu0 %vm4878_vm3, %v4875_v8 }
 0xf53   : > { %4426 = vmatprep.subr.bf16.mxu0 %v4877_v27 }
 0xf56   : > { %4428 = vmatpush3.bf16.msra.mxu0 %v5199_v7 }
 0xf57   : > { %4430 = vmatprep.subr.bf16.mxu0 %v5019_v4  ;;  %v1444_v4 = vld [vmem:[%s5879_s8] sm:$0x1] }
0x1024   : > { %v1429_v19 = vpop.f32.mrb[8].mxu0 }
0x1025   : > { %v1436_v20 = vadd.f32 %v1434_v57, %v1429_v19  ;;  %v4000_v15 = vpop.f32.mrb[9].mxu0 }
0x1026   : > { %v1933_v15 = vld [vmem:[%s5874_s3 + $0x8] sm:$0xff] }
0x1027   : > { %v1438_v22 = vadd.f32 %v1437_v59, %v1436_v20 }
0x1029   : > { %v1439_v23 = vmax.f32 %v1438_v22, 0.0  ;;  %v1935_v22 = vld [vmem:[%s5874_s3 + $0x18] sm:$0xff] }
0x102b   : > { %4010 = vmatmul.mubr.msk.f32.vlgmr.msra.gmra.mrb[10].mxu0 %vm413_vm1, %v1439_v23  ;;  %v1932_v23 = vld [vmem:[%s5874_s3] sm:$0xff] }
0x102c   : > { %4432 = vmatpush1.bf16.msra.mxu0 %v5031_v9  ;;  %1627 = vmatprep.mubr.f32.mxu0 %v4875_v8 }
0x102d   : > { %4434 = vmatprep.subr.bf16.mxu0 %v5033_v10  ;;  %v1529_v10 = vpop.permute.xlu1 %1528 }
0x1030   : > { %4436 = vmatpush1.bf16.msra.mxu0 %v5043_v13 }
0x1031   : > { %4437 = vmatprep.subr.bf16.mxu0 %v4877_v27 }
0x10fe   : > { %v1514_v24 = vpop.f32.mrb[10].mxu0 }
0x10ff   : > { %v1515_v25 = vadd.f32 %v1514_v24, %v1444_v4  ;;  %v4011_v26 = vpop.f32.mrb[11].mxu0  ;;  %v5410_v4 = vpack.c.bf16 %v1935_v22, %v1933_v15  ;;  %v1934_v24 = vld [vmem:[%s5874_s3 + $0x10] sm:$0xff] }
0x1100   : > { %v1939_v26 = vld [vmem:[%s5874_s3 + $0x38] sm:$0xff] }
0x1101   : > { %v1520_v29 = vadd.f32 %v1519_v63, %v1515_v25 }
0x1103   : > { %v3592_v31 = vmul.f32 -1.442695, %v1520_v29  ;;  %v5421_v29 = vpack.c.bf16 %v1934_v24, %v1932_v23 }
0x1105   : > { %4723 = vpow2.f32 %v3592_v31 }
0x110f   : > { %v4724_v32 = vpop.eup %4723 }
0x1110   : > { %v1524_v9 = vadd.f32 1.0, %v4724_v32  ;;  %v1936_v32 = vld [vmem:[%s5874_s3 + $0x20] sm:$0xff] }
0x1112   : > { %4725 = vrcp.f32 %v1524_v9  ;;  %v1938_v9 = vld [vmem:[%s5874_s3 + $0x30] sm:$0xff] }
0x111c   : > { %v4726_v34 = vpop.eup %4725 }
0x111d   : > { %v1531_v35 = vmul.f32 %v4726_v34, %v1529_v10  ;;  %v1538_v40 = vsub.f32 1.0, %v4726_v34  ;;  %v1544_v42 = vmul.f32 %v4726_v34, %v5284_v14  ;;  %v5433_v34 = vpack.c.bf16 %v1938_v9, %v1936_v32  ;;  %v2198_v32 = vld [vmem:[%s5878_s7] sm:$0xff]  ;;  %v2199_v9 = vld [vmem:[%s5878_s7 + $0x8] sm:$0xff] }
0x111f   : > { %1533 = vrot.lane.b32.xlu0 %v1531_v35, %s5884_s19 }
0x1191   : > { %v1534_v13 = vpop.permute.xlu0 %1533 }
0x1192   : > { %v1536_v37 = vadd.f32 %v1534_v13, %v1515_v25  ;;  %v1937_v25 = vld [vmem:[%s5874_s3 + $0x28] sm:$0xff] }
0x1193   : > { %v5423_v31 = vpack.c.bf16 %v1939_v26, %v1937_v25 }
0x1194   : > { %4727 = vtanh.f32 %v1536_v37 }
0x119e   : > { %v4728_v38 = vpop.eup %4727 }
0x119f   : > { %1540 = vrot.lane.b32.xlu1 %v4728_v38, %s5886_s25 }
0x1211   : > { %v1541_v41 = vpop.permute.xlu1 %1540 }
0x1212   : > { %v1543_v21 = vmul.f32 %v1541_v41, %v1538_v40 }
0x1214   : > { %v5348_v43 = vadd.f32 %v1544_v42, %v1543_v21  ;;  %v5450_v42 = vld [vmem:[%s5000_s16 + $0x4] ss:$8 sm:$0x3] }
0x1216   : > { %1547 = vrot.lane.b32.xlu1 %v5348_v43, %s5886_s25 }
0x1288   : > { %v1548_v44 = vpop.permute.xlu1 %1547 }
0x1289   : > { %1550 = vst.msk [vmem:[%s5002_s22 + $0x2] sm:$0x1] %vm791_vm4, %v1548_v44  ;;  %3594 = vmatmul.mubr.msk.f32.vlgmr.msra.gmra.mrb[12].mxu0 %vm413_vm1, %v1548_v44 }
0x128a   : > { %4439 = vmatpush3.bf16.msra.mxu0 %v5076_v28  ;;  %4044 = vmatprep.mubr.msk.f32.mxu0 %vm4878_vm3, %v4875_v8  ;;  %v3593_v28 = vld [vmem:[%s5000_s16 + $0x3] ss:$8 sm:$0x3] }
0x128b   : > { %4440 = vmatprep.subr.bf16.mxu0 %v4877_v27  ;;  %v1813_v60 = vrot.slane %v3593_v28, 1 }
0x128e   : > { %4442 = vmatpush3.bf16.msra.mxu0 %v5083_v30 }
0x128f   : > { %4443 = vmatprep.subr.bf16.mxu0 %v4877_v27 }
0x1292   : > { %4445 = vmatpush3.bf16.msra.mxu0 %v5093_v33  ;;  %v1635_v33 = vld [vmem:[%s5875_s4] sm:$0x1] }
0x1293   : > { %4446 = vmatprep.subr.bf16.mxu0 %v4877_v27 }
0x1296   : > { %4448 = vmatpush3.bf16.msra.mxu0 %v5103_v36 }
0x1297   : > { %4449 = vmatprep.subr.bf16.mxu0 %v4877_v27 }
0x129a   : > { %4451 = vmatpush3.bf16.msra.mxu0 %v5113_v39 }
0x129b   : > { %4452 = vmatprep.subr.bf16.mxu0 %v4877_v27 }
0x129e   : > { %4454 = vmatpush3.bf16.msra.mxu0 %v5125_v47 }
0x129f   : > { %4455 = vmatprep.subr.bf16.mxu0 %v4877_v27 }
0x12a2   : > { %4457 = vmatpush3.bf16.msra.mxu0 %v5138_v50  ;;  %v1897_v50 = vld [vmem:[%s5880_s9] sm:$0x1] }
0x12a3   : > { %4458 = vmatprep.subr.bf16.mxu0 %v4877_v27 }
0x12a6   : > { %4460 = vmatpush3.bf16.msra.mxu0 %v5148_v53 }
0x12a7   : > { %4505 = vmatprep.subr.bf16.mxu0 %v4877_v27 }
0x135c   : > { %v1629_v30 = vpop.f32.mrb[12].mxu0 }
0x135d   : > { %v1634_v36 = vadd.f32 %v3593_v28, %v1629_v30  ;;  %v1631_v39 = vpop.f32.mrb[13].mxu0 }
0x135e   : > { %v1898_v53 = vadd.f32 %v1897_v50, %v1631_v39  ;;  %v2030_v50 = vld [vmem:[%s5873_s2 + $0x10] sm:$0xff] }
0x135f   : > { %v1636_v45 = vadd.f32 %v1635_v33, %v1634_v36  ;;  %v2276_v36 = vld [vmem:[%s5880_s9] sm:$0x1] }
0x1361   : > { %v1637_v47 = vsel %vm491_vm2, %v1636_v45, -inf }
0x1362   : > { %1638 = vmax.xlane.f32.xlu0 %v1637_v47  ;;  %v2029_v47 = vld [vmem:[%s5873_s2 + $0x8] sm:$0xff] }
0x1378   : > { %1907 = vrot.lane.b32.xlu0 %v1898_v53, %s5884_s19 }
0x13ef   : > { %v1639_v46 = vpop.xlane.xlu0 %1638 }
0x13f0   : > { %v1640_v48 = vsub.f32 %v1636_v45, %v1639_v46  ;;  %v2028_v45 = vld [vmem:[%s5873_s2] sm:$0xff]  ;;  %v2031_v46 = vld [vmem:[%s5873_s2 + $0x18] sm:$0xff] }
0x13f2   : > { %v1641_v49 = vmul.f32 1.442695, %v1640_v48  ;;  %v5479_v48 = vpack.c.bf16 %v2031_v46, %v2030_v50 }
0x13f3   : > { %v1908_v57 = vpop.permute.xlu0 %1907 }
0x13f4   : > { %4729 = vpow2.f32 %v1641_v49  ;;  %v2032_v49 = vld [vmem:[%s5873_s2 + $0x20] sm:$0xff] }
0x13fe   : > { %v4730_v14 = vpop.eup %4729 }
0x13ff   : > { %v1643_v52 = vsel %vm491_vm2, %v4730_v14, 0.0 }
0x1400   : > { %1644 = vadd.xlane.f32.xlu1 %v1643_v52 }
0x148d   : > { %v1645_v51 = vpop.xlane.xlu1 %1644 }
0x148e   : > { %4731 = vrcp.f32 %v1645_v51  ;;  %v2034_v51 = vld [vmem:[%s5873_s2 + $0x30] sm:$0xff] }
0x1498   : > { %v4732_v54 = vpop.eup %4731 }
0x1499   : > { %v1647_v55 = vmul.f32 %v4732_v54, %v4730_v14  ;;  %v2033_v14 = vld [vmem:[%s5873_s2 + $0x28] sm:$0xff]  ;;  %v2035_v54 = vld [vmem:[%s5873_s2 + $0x38] sm:$0xff] }
0x149a   : > { %v5489_v52 = vpack.c.bf16 %v2033_v14, %v2032_v49 }
0x149b   : > { %1648 = vst [vmem:[%s5004_s24 + $0x3] sm:$0x1] %v1647_v55  ;;  %4045 = vmatmul.mubr.f32.vlgmr.msra.gmra.mrb[14].mxu0 %v1647_v55  ;;  %v5499_v55 = vpack.c.bf16 %v2035_v54, %v2034_v51 }
0x149c   : > { %4112 = vmatprep.mubr.msk.f32.mxu0 %vm4878_vm3, %v4875_v8 }
0x156e   : > { %v1731_v56 = vpop.f32.mrb[14].mxu0 }
0x156f   : > { %v4046_v58 = vpop.f32.mrb[15].mxu0  ;;  %4056 = vmatmul.mubr.msk.f32.vlgmr.msra.gmra.mrb[12].mxu1 %vm413_vm1, %v1731_v56  ;;  %v2036_v56 = vld [vmem:[%s5873_s2 + $0x40] sm:$0xff] }
0x1570   : > { %4469 = vmatpush3.bf16.msra.mxu1 %v5189_v3  ;;  %4066 = vmatprep.mubr.msk.f32.mxu1 %vm4878_vm3, %v4875_v8  ;;  %v1823_v3 = vld [vmem:[%s5879_s8] sm:$0x1]  ;;  %v2037_v58 = vld [vmem:[%s5873_s2 + $0x48] sm:$0xff] }
0x1571   : > { %4470 = vmatprep.subr.bf16.mxu1 %v4877_v27 }
0x1574   : > { %4472 = vmatpush3.bf16.msra.mxu1 %v5199_v7 }
0x1575   : > { %4474 = vmatprep.subr.bf16.mxu1 %v5410_v4 }
0x1642   : > { %v1808_v61 = vpop.f32.mrb[12].mxu1 }
0x1643   : > { %v1815_v63 = vadd.f32 %v1813_v60, %v1808_v61  ;;  %v4057_v0 = vpop.f32.mrb[13].mxu1  ;;  %v5509_v60 = vpack.c.bf16 %v2037_v58, %v2036_v56 }
0x1645   : > { %v1817_v1 = vadd.f32 %v1816_v62, %v1815_v63 }
0x1647   : > { %v1818_v2 = vmax.f32 %v1817_v1, 0.0 }
0x1649   : > { %4067 = vmatmul.mubr.msk.f32.vlgmr.msra.gmra.mrb[14].mxu1 %vm413_vm1, %v1818_v2  ;;  %v2038_v2 = vld [vmem:[%s5873_s2 + $0x50] sm:$0xff] }
0x164a   : > { %2006 = vmatprep.mubr.f32.mxu1 %v4875_v8  ;;  %4476 = vmatpush1.bf16.msra.mxu1 %v5421_v29 }
0x164b   : > { %4478 = vmatprep.subr.bf16.mxu1 %v5423_v31 }
0x164e   : > { %4480 = vmatpush1.bf16.msra.mxu1 %v5433_v34 }
0x164f   : > { %4481 = vmatprep.subr.bf16.mxu1 %v4877_v27 }
0x171c   : > { %v1893_v5 = vpop.f32.mrb[14].mxu1 }
0x171d   : > { %v1894_v7 = vadd.f32 %v1893_v5, %v1823_v3  ;;  %v4068_v6 = vpop.f32.mrb[15].mxu1  ;;  %v2039_v3 = vld [vmem:[%s5873_s2 + $0x58] sm:$0xff] }
0x171e   : > { %v5521_v5 = vpack.c.bf16 %v2039_v3, %v2038_v2  ;;  %v2041_v6 = vld [vmem:[%s5873_s2 + $0x68] sm:$0xff] }
0x171f   : > { %v1899_v11 = vadd.f32 %v1898_v53, %v1894_v7  ;;  %v5473_v53 = vpack.c.bf16 %v2029_v47, %v2028_v45 }
0x1721   : > { %v3597_v12 = vmul.f32 -1.442695, %v1899_v11 }
0x1723   : > { %4733 = vpow2.f32 %v3597_v12  ;;  %v2042_v12 = vld [vmem:[%s5873_s2 + $0x70] sm:$0xff] }
0x172d   : > { %v4734_v16 = vpop.eup %4733 }
0x172e   : > { %v1903_v17 = vadd.f32 1.0, %v4734_v16  ;;  %v2043_v16 = vld [vmem:[%s5873_s2 + $0x78] sm:$0xff] }
0x1730   : > { %4735 = vrcp.f32 %v1903_v17  ;;  %v5540_v17 = vpack.c.bf16 %v2043_v16, %v2042_v12 }
0x173a   : > { %v4736_v18 = vpop.eup %4735 }
0x173b   : > { %v1910_v19 = vmul.f32 %v4736_v18, %v1908_v57  ;;  %v1917_v35 = vsub.f32 1.0, %v4736_v18  ;;  %v1923_v37 = vmul.f32 %v4736_v18, %v5348_v43  ;;  %v2014_v43 = vld [vmem:[%s5875_s4] sm:$0x1]  ;;  %v2115_v57 = vld [vmem:[%s5876_s5 + $0x8] sm:$0xff] }
0x173c   : > { %v2114_v18 = vld [vmem:[%s5876_s5] sm:$0xff] }
0x173d   : > { %1912 = vrot.lane.b32.xlu1 %v1910_v19, %s5884_s19  ;;  %s5897_s19 = smov 96   ;;  %v2116_v19 = vld [vmem:[%s5876_s5 + $0x10] sm:$0xff] }
0x17af   : > { %v1913_v59 = vpop.permute.xlu1 %1912 }
0x17b0   : > { %v1915_v20 = vadd.f32 %v1913_v59, %v1894_v7  ;;  %v2040_v7 = vld [vmem:[%s5873_s2 + $0x60] sm:$0xff]  ;;  %v5554_v59 = vpack.c.bf16 %v2115_v57, %v2114_v18 }
0x17b1   : > { %v5530_v11 = vpack.c.bf16 %v2041_v6, %v2040_v7  ;;  %v2393_v7 = vld [vmem:[%s5875_s4] sm:$0x1] }
0x17b2   : > { %4737 = vtanh.f32 %v1915_v20  ;;  %v2117_v20 = vld [vmem:[%s5876_s5 + $0x18] sm:$0xff]  ;;  %4507 = vmatpush3.bf16.msra.mxu0 %v5554_v59  ;;  %v2655_v57 = vld [vmem:[%s5880_s9] sm:$0x1] }
0x17b3   : > { %v5560_v15 = vpack.c.bf16 %v2117_v20, %v2116_v19  ;;  %4508 = vmatprep.subr.bf16.mxu0 %v4877_v27 }
0x17b6   : > { %4510 = vmatpush3.bf16.msra.mxu0 %v5560_v15 }
0x17b7   : > { %4511 = vmatprep.subr.bf16.mxu0 %v4877_v27 }
0x17bc   : > { %v4738_v10 = vpop.eup %4737 }
0x17bd   : > { %1919 = vrot.lane.b32.xlu0 %v4738_v10, %s5897_s19  ;;  %v5581_v10 = vpack.c.bf16 %v2199_v9, %v2198_v32 }
0x182f   : > { %v1920_v13 = vpop.permute.xlu0 %1919 }
0x1830   : > { %v1922_v38 = vmul.f32 %v1920_v13, %v1917_v35  ;;  %v2200_v35 = vld [vmem:[%s5878_s7 + $0x10] sm:$0xff]  ;;  %v2201_v13 = vld [vmem:[%s5878_s7 + $0x18] sm:$0xff] }
0x1832   : > { %v5440_v40 = vadd.f32 %v1923_v37, %v1922_v38  ;;  %v5591_v37 = vpack.c.bf16 %v2201_v13, %v2200_v35  ;;  %v2192_v38 = vrot.slane %v5450_v42, 1 }
0x1834   : > { %1926 = vrot.lane.b32.xlu1 %v5440_v40, %s5897_s19 }
0x18a6   : > { %v1927_v41 = vpop.permute.xlu1 %1926 }
0x18a7   : > { %1929 = vst.msk [vmem:[%s5002_s22 + $0x3] sm:$0x1] %vm791_vm4, %v1927_v41  ;;  %3599 = vmatmul.mubr.msk.f32.vlgmr.msra.gmra.mrb[16].mxu1 %vm413_vm1, %v1927_v41 }
0x18a8   : > { %4101 = vmatprep.mubr.msk.f32.mxu1 %vm4878_vm3, %v4875_v8  ;;  %4483 = vmatpush3.bf16.msra.mxu1 %v5473_v53 }
0x18a9   : > { %4484 = vmatprep.subr.bf16.mxu1 %v4877_v27 }
0x18ac   : > { %4486 = vmatpush3.bf16.msra.mxu1 %v5479_v48 }
0x18ad   : > { %4487 = vmatprep.subr.bf16.mxu1 %v4877_v27 }
0x18b0   : > { %4489 = vmatpush3.bf16.msra.mxu1 %v5489_v52 }
0x18b1   : > { %4490 = vmatprep.subr.bf16.mxu1 %v4877_v27 }
0x18b4   : > { %4492 = vmatpush3.bf16.msra.mxu1 %v5499_v55 }
0x18b5   : > { %4493 = vmatprep.subr.bf16.mxu1 %v4877_v27 }
0x18b8   : > { %4495 = vmatpush3.bf16.msra.mxu1 %v5509_v60 }
0x18b9   : > { %4496 = vmatprep.subr.bf16.mxu1 %v4877_v27 }
0x18bc   : > { %4498 = vmatpush3.bf16.msra.mxu1 %v5521_v5 }
0x18bd   : > { %4499 = vmatprep.subr.bf16.mxu1 %v4877_v27 }
0x18c0   : > { %4501 = vmatpush3.bf16.msra.mxu1 %v5530_v11 }
0x18c1   : > { %4502 = vmatprep.subr.bf16.mxu1 %v4877_v27 }
0x18c4   : > { %4504 = vmatpush3.bf16.msra.mxu1 %v5540_v17 }
0x18c5   : > { %4549 = vmatprep.subr.bf16.mxu1 %v4877_v27 }
0x197a   : > { %v2008_v21 = vpop.f32.mrb[16].mxu1 }
0x197b   : > { %v2013_v44 = vadd.f32 %v5450_v42, %v2008_v21  ;;  %v2010_v28 = vpop.f32.mrb[17].mxu1  ;;  %v2195_v21 = vld [vmem:[%s5877_s6] sm:$0x1] }
0x197c   : > { %v5460_v39 = vadd.f32 %v2276_v36, %v2010_v28  ;;  %v2202_v42 = vld [vmem:[%s5879_s8] sm:$0x1] }
0x197d   : > { %v2015_v30 = vadd.f32 %v2014_v43, %v2013_v44 }
0x197f   : > { %v2016_v33 = vsel %vm491_vm2, %v2015_v30, -inf }
0x1980   : > { %2017 = vmax.xlane.f32.xlu0 %v2016_v33 }
0x1996   : > { %2286 = vrot.lane.b32.xlu0 %v5460_v39, %s5898_s13 }
0x1a0d   : > { %v2018_v61 = vpop.xlane.xlu0 %2017 }
0x1a0e   : > { %v2019_v62 = vsub.f32 %v2015_v30, %v2018_v61 }
0x1a10   : > { %v2020_v63 = vmul.f32 1.442695, %v2019_v62 }
0x1a11   : > { %v2287_v51 = vpop.permute.xlu0 %2286 }
0x1a12   : > { %4739 = vpow2.f32 %v2020_v63 }
0x1a1c   : > { %v4740_v0 = vpop.eup %4739 }
0x1a1d   : > { %v2022_v1 = vsel %vm491_vm2, %v4740_v0, 0.0 }
0x1a1e   : > { %2023 = vadd.xlane.f32.xlu1 %v2022_v1 }
0x1aab   : > { %v2024_v22 = vpop.xlane.xlu1 %2023 }
0x1aac   : > { %4741 = vrcp.f32 %v2024_v22 }
0x1ab6   : > { %v4742_v23 = vpop.eup %4741 }
0x1ab7   : > { %v2026_v24 = vmul.f32 %v4742_v23, %v4740_v0 }
0x1ab9   : > { %2027 = vst [vmem:[%s5004_s24 + $0x4] sm:$0x1] %v2026_v24  ;;  %4102 = vmatmul.mubr.f32.vlgmr.msra.gmra.mrb[18].mxu1 %v2026_v24 }
0x1aba   : > { %4551 = vmatpush3.bf16.msra.mxu1 %v5554_v59  ;;  %4169 = vmatprep.mubr.msk.f32.mxu1 %vm4878_vm3, %v4875_v8 }
0x1abb   : > { %4552 = vmatprep.subr.bf16.mxu1 %v4877_v27 }
0x1abe   : > { %4554 = vmatpush3.bf16.msra.mxu1 %v5560_v15 }
0x1abf   : > { %4555 = vmatprep.subr.bf16.mxu1 %v4877_v27 }
0x1b8c   : > { %v2110_v25 = vpop.f32.mrb[18].mxu1 }
0x1b8d   : > { %v4103_v26 = vpop.f32.mrb[19].mxu1  ;;  %4113 = vmatmul.mubr.msk.f32.vlgmr.msra.gmra.mrb[16].mxu0 %vm413_vm1, %v2110_v25 }
0x1b8e   : > { %4123 = vmatprep.mubr.msk.f32.mxu0 %vm4878_vm3, %v4875_v8  ;;  %4513 = vmatpush3.bf16.msra.mxu0 %v5581_v10 }
0x1b8f   : > { %4514 = vmatprep.subr.bf16.mxu0 %v4877_v27 }
0x1b92   : > { %4516 = vmatpush3.bf16.msra.mxu0 %v5591_v37 }
0x1b93   : > { %4518 = vmatprep.subr.bf16.mxu0 %v5410_v4 }
0x1c60   : > { %v2187_v41 = vpop.f32.mrb[16].mxu0 }
0x1c61   : > { %v2194_v43 = vadd.f32 %v2192_v38, %v2187_v41  ;;  %v4114_v44 = vpop.f32.mrb[17].mxu0 }
0x1c63   : > { %v2196_v28 = vadd.f32 %v2195_v21, %v2194_v43  ;;  %v2574_v21 = vld [vmem:[%s5877_s6] sm:$0x1] }
0x1c65   : > { %v2197_v30 = vmax.f32 %v2196_v28, 0.0 }
0x1c67   : > { %4124 = vmatmul.mubr.msk.f32.vlgmr.msra.gmra.mrb[18].mxu0 %vm413_vm1, %v2197_v30 }
0x1c68   : > { %4520 = vmatpush1.bf16.msra.mxu0 %v5421_v29  ;;  %2385 = vmatprep.mubr.f32.mxu0 %v4875_v8 }
0x1c69   : > { %4522 = vmatprep.subr.bf16.mxu0 %v5423_v31 }
0x1c6c   : > { %4524 = vmatpush1.bf16.msra.mxu0 %v5433_v34 }
0x1c6d   : > { %4525 = vmatprep.subr.bf16.mxu0 %v4877_v27 }
0x1d3a   : > { %v2272_v33 = vpop.f32.mrb[18].mxu0 }
0x1d3b   : > { %v2273_v36 = vadd.f32 %v2272_v33, %v2202_v42  ;;  %v4125_v45 = vpop.f32.mrb[19].mxu0  ;;  %v2581_v42 = vld [vmem:[%s5879_s8] sm:$0x1] }
0x1d3d   : > { %v2278_v47 = vadd.f32 %v5460_v39, %v2273_v36 }
0x1d3f   : > { %v3602_v50 = vmul.f32 -1.442695, %v2278_v47 }
0x1d41   : > { %4743 = vpow2.f32 %v3602_v50 }
0x1d4b   : > { %v4744_v46 = vpop.eup %4743 }
0x1d4c   : > { %v2282_v49 = vadd.f32 1.0, %v4744_v46 }
0x1d4e   : > { %4745 = vrcp.f32 %v2282_v49 }
0x1d58   : > { %v4746_v14 = vpop.eup %4745 }
0x1d59   : > { %v2289_v54 = vmul.f32 %v4746_v14, %v2287_v51  ;;  %v2296_v62 = vsub.f32 1.0, %v4746_v14  ;;  %v2302_v39 = vmul.f32 %v4746_v14, %v5440_v40  ;;  %v3603_v40 = vld [vmem:[%s5000_s16 + $0x5] ss:$8 sm:$0x3] }
0x1d5a   : > { %v2571_v38 = vrot.slane %v3603_v40, 1 }
0x1d5b   : > { %2291 = vrot.lane.b32.xlu1 %v2289_v54, %s5898_s13 }
0x1dcd   : > { %v2292_v56 = vpop.permute.xlu1 %2291 }
0x1dce   : > { %v2294_v58 = vadd.f32 %v2292_v56, %v2273_v36 }
0x1dd0   : > { %4747 = vtanh.f32 %v2294_v58 }
0x1dda   : > { %v4748_v61 = vpop.eup %4747 }
0x1ddb   : > { %2298 = vrot.lane.b32.xlu0 %v4748_v61, %s5897_s19 }
0x1e4d   : > { %v2299_v63 = vpop.permute.xlu0 %2298 }
0x1e4e   : > { %v2301_v0 = vmul.f32 %v2299_v63, %v2296_v62 }
0x1e50   : > { %v5612_v1 = vadd.f32 %v2302_v39, %v2301_v0 }
0x1e52   : > { %2305 = vrot.lane.b32.xlu1 %v5612_v1, %s5897_s19 }
0x1ec4   : > { %v2306_v2 = vpop.permute.xlu1 %2305 }
0x1ec5   : > { %2308 = vst.msk [vmem:[%s5002_s22 + $0x4] sm:$0x1] %vm791_vm4, %v2306_v2  ;;  %3604 = vmatmul.mubr.msk.f32.vlgmr.msra.gmra.mrb[20].mxu0 %vm413_vm1, %v2306_v2 }
0x1ec6   : > { %4527 = vmatpush3.bf16.msra.mxu0 %v5473_v53  ;;  %4158 = vmatprep.mubr.msk.f32.mxu0 %vm4878_vm3, %v4875_v8 }
0x1ec7   : > { %4528 = vmatprep.subr.bf16.mxu0 %v4877_v27 }
0x1eca   : > { %4530 = vmatpush3.bf16.msra.mxu0 %v5479_v48 }
0x1ecb   : > { %4531 = vmatprep.subr.bf16.mxu0 %v4877_v27 }
0x1ece   : > { %4533 = vmatpush3.bf16.msra.mxu0 %v5489_v52 }
0x1ecf   : > { %4534 = vmatprep.subr.bf16.mxu0 %v4877_v27 }
0x1ed2   : > { %4536 = vmatpush3.bf16.msra.mxu0 %v5499_v55 }
0x1ed3   : > { %4537 = vmatprep.subr.bf16.mxu0 %v4877_v27 }
0x1ed6   : > { %4539 = vmatpush3.bf16.msra.mxu0 %v5509_v60 }
0x1ed7   : > { %4540 = vmatprep.subr.bf16.mxu0 %v4877_v27 }
0x1eda   : > { %4542 = vmatpush3.bf16.msra.mxu0 %v5521_v5 }
0x1edb   : > { %4543 = vmatprep.subr.bf16.mxu0 %v4877_v27 }
0x1ede   : > { %4545 = vmatpush3.bf16.msra.mxu0 %v5530_v11 }
0x1edf   : > { %4546 = vmatprep.subr.bf16.mxu0 %v4877_v27 }
0x1ee2   : > { %4548 = vmatpush3.bf16.msra.mxu0 %v5540_v17 }
0x1ee3   : > { %4593 = vmatprep.subr.bf16.mxu0 %v4877_v27 }
0x1f98   : > { %v2387_v3 = vpop.f32.mrb[20].mxu0 }
0x1f99   : > { %v2392_v6 = vadd.f32 %v3603_v40, %v2387_v3  ;;  %v2389_v12 = vpop.f32.mrb[21].mxu0 }
0x1f9a   : > { %v2656_v19 = vadd.f32 %v2655_v57, %v2389_v12  ;;  %v3034_v57 = vld [vmem:[%s5880_s9] sm:$0x1] }
0x1f9b   : > { %v2394_v16 = vadd.f32 %v2393_v7, %v2392_v6  ;;  %v2772_v7 = vld [vmem:[%s5875_s4] sm:$0x1] }
0x1f9d   : > { %v2395_v18 = vsel %vm491_vm2, %v2394_v16, -inf }
0x1f9e   : > { %2396 = vmax.xlane.f32.xlu0 %v2395_v18 }
0x1fb4   : > { %2665 = vrot.lane.b32.xlu0 %v2656_v19, %s5898_s13 }
0x202b   : > { %v2397_v20 = vpop.xlane.xlu0 %2396 }
0x202c   : > { %v2398_v22 = vsub.f32 %v2394_v16, %v2397_v20 }
0x202e   : > { %v2399_v23 = vmul.f32 1.442695, %v2398_v22 }
0x202f   : > { %v2666_v51 = vpop.permute.xlu0 %2665 }
0x2030   : > { %4749 = vpow2.f32 %v2399_v23 }
0x203a   : > { %v4750_v24 = vpop.eup %4749 }
0x203b   : > { %v2401_v25 = vsel %vm491_vm2, %v4750_v24, 0.0 }
0x203c   : > { %2402 = vadd.xlane.f32.xlu1 %v2401_v25 }
0x20c9   : > { %v2403_v26 = vpop.xlane.xlu1 %2402 }
0x20ca   : > { %4751 = vrcp.f32 %v2403_v26 }
0x20d4   : > { %v4752_v32 = vpop.eup %4751 }
0x20d5   : > { %v2405_v9 = vmul.f32 %v4752_v32, %v4750_v24 }
0x20d7   : > { %2406 = vst [vmem:[%s5004_s24 + $0x5] sm:$0x1] %v2405_v9  ;;  %4159 = vmatmul.mubr.f32.vlgmr.msra.gmra.mrb[22].mxu0 %v2405_v9 }
0x20d8   : > { %4595 = vmatpush3.bf16.msra.mxu0 %v5554_v59  ;;  %4226 = vmatprep.mubr.msk.f32.mxu0 %vm4878_vm3, %v4875_v8 }
0x20d9   : > { %4596 = vmatprep.subr.bf16.mxu0 %v4877_v27 }
0x20dc   : > { %4598 = vmatpush3.bf16.msra.mxu0 %v5560_v15 }
0x20dd   : > { %4599 = vmatprep.subr.bf16.mxu0 %v4877_v27 }
0x21aa   : > { %v2489_v35 = vpop.f32.mrb[22].mxu0 }
0x21ab   : > { %v4160_v13 = vpop.f32.mrb[23].mxu0  ;;  %4170 = vmatmul.mubr.msk.f32.vlgmr.msra.gmra.mrb[20].mxu1 %vm413_vm1, %v2489_v35 }
0x21ac   : > { %4557 = vmatpush3.bf16.msra.mxu1 %v5581_v10  ;;  %4180 = vmatprep.mubr.msk.f32.mxu1 %vm4878_vm3, %v4875_v8 }
0x21ad   : > { %4558 = vmatprep.subr.bf16.mxu1 %v4877_v27 }
0x21b0   : > { %4560 = vmatpush3.bf16.msra.mxu1 %v5591_v37 }
0x21b1   : > { %4562 = vmatprep.subr.bf16.mxu1 %v5410_v4 }
0x227e   : > { %v2566_v41 = vpop.f32.mrb[20].mxu1 }
0x227f   : > { %v2573_v43 = vadd.f32 %v2571_v38, %v2566_v41  ;;  %v4171_v44 = vpop.f32.mrb[21].mxu1 }
0x2281   : > { %v2575_v28 = vadd.f32 %v2574_v21, %v2573_v43 }
0x2283   : > { %v2576_v30 = vmax.f32 %v2575_v28, 0.0 }
0x2285   : > { %4181 = vmatmul.mubr.msk.f32.vlgmr.msra.gmra.mrb[22].mxu1 %vm413_vm1, %v2576_v30 }
0x2286   : > { %4564 = vmatpush1.bf16.msra.mxu1 %v5421_v29  ;;  %2764 = vmatprep.mubr.f32.mxu1 %v4875_v8 }
0x2287   : > { %4566 = vmatprep.subr.bf16.mxu1 %v5423_v31 }
0x228a   : > { %4568 = vmatpush1.bf16.msra.mxu1 %v5433_v34 }
0x228b   : > { %4569 = vmatprep.subr.bf16.mxu1 %v4877_v27 }
0x2358   : > { %v2651_v33 = vpop.f32.mrb[22].mxu1 }
0x2359   : > { %v2652_v36 = vadd.f32 %v2651_v33, %v2581_v42  ;;  %v4182_v45 = vpop.f32.mrb[23].mxu1 }
0x235b   : > { %v2657_v47 = vadd.f32 %v2656_v19, %v2652_v36 }
0x235d   : > { %v3607_v50 = vmul.f32 -1.442695, %v2657_v47 }
0x235f   : > { %4753 = vpow2.f32 %v3607_v50 }
0x2369   : > { %v4754_v46 = vpop.eup %4753 }
0x236a   : > { %v2661_v49 = vadd.f32 1.0, %v4754_v46 }
0x236c   : > { %4755 = vrcp.f32 %v2661_v49 }
0x2376   : > { %v4756_v14 = vpop.eup %4755 }
0x2377   : > { %v2668_v54 = vmul.f32 %v4756_v14, %v2666_v51  ;;  %v2675_v62 = vsub.f32 1.0, %v4756_v14  ;;  %v2681_v39 = vmul.f32 %v4756_v14, %v5612_v1  ;;  %v3608_v1 = vld [vmem:[%s5000_s16 + $0x6] ss:$8 sm:$0x3] }
0x2379   : > { %2670 = vrot.lane.b32.xlu1 %v2668_v54, %s5898_s13 }
0x23eb   : > { %v2671_v56 = vpop.permute.xlu1 %2670 }
0x23ec   : > { %v2673_v58 = vadd.f32 %v2671_v56, %v2652_v36 }
0x23ee   : > { %4757 = vtanh.f32 %v2673_v58 }
0x23f8   : > { %v4758_v61 = vpop.eup %4757 }
0x23f9   : > { %2677 = vrot.lane.b32.xlu0 %v4758_v61, %s5897_s19 }
0x246b   : > { %v2678_v63 = vpop.permute.xlu0 %2677 }
0x246c   : > { %v2680_v0 = vmul.f32 %v2678_v63, %v2675_v62 }
0x246e   : > { %v5676_v2 = vadd.f32 %v2681_v39, %v2680_v0 }
0x2470   : > { %2684 = vrot.lane.b32.xlu1 %v5676_v2, %s5897_s19 }
0x24e2   : > { %v2685_v40 = vpop.permute.xlu1 %2684 }
0x24e3   : > { %2687 = vst.msk [vmem:[%s5002_s22 + $0x5] sm:$0x1] %vm791_vm4, %v2685_v40  ;;  %3609 = vmatmul.mubr.msk.f32.vlgmr.msra.gmra.mrb[24].mxu1 %vm413_vm1, %v2685_v40 }
0x24e4   : > { %4571 = vmatpush3.bf16.msra.mxu1 %v5473_v53  ;;  %4215 = vmatprep.mubr.msk.f32.mxu1 %vm4878_vm3, %v4875_v8 }
0x24e5   : > { %4572 = vmatprep.subr.bf16.mxu1 %v4877_v27 }
0x24e8   : > { %4574 = vmatpush3.bf16.msra.mxu1 %v5479_v48 }
0x24e9   : > { %4575 = vmatprep.subr.bf16.mxu1 %v4877_v27 }
0x24ec   : > { %4577 = vmatpush3.bf16.msra.mxu1 %v5489_v52 }
0x24ed   : > { %4578 = vmatprep.subr.bf16.mxu1 %v4877_v27 }
0x24f0   : > { %4580 = vmatpush3.bf16.msra.mxu1 %v5499_v55 }
0x24f1   : > { %4581 = vmatprep.subr.bf16.mxu1 %v4877_v27 }
0x24f4   : > { %4583 = vmatpush3.bf16.msra.mxu1 %v5509_v60 }
0x24f5   : > { %4584 = vmatprep.subr.bf16.mxu1 %v4877_v27 }
0x24f8   : > { %4586 = vmatpush3.bf16.msra.mxu1 %v5521_v5 }
0x24f9   : > { %4587 = vmatprep.subr.bf16.mxu1 %v4877_v27 }
0x24fc   : > { %4589 = vmatpush3.bf16.msra.mxu1 %v5530_v11 }
0x24fd   : > { %4590 = vmatprep.subr.bf16.mxu1 %v4877_v27 }
0x2500   : > { %4592 = vmatpush3.bf16.msra.mxu1 %v5540_v17 }
0x2501   : > { %4637 = vmatprep.subr.bf16.mxu1 %v4877_v27 }
0x25b6   : > { %v2766_v3 = vpop.f32.mrb[24].mxu1 }
0x25b7   : > { %v2771_v6 = vadd.f32 %v3608_v1, %v2766_v3  ;;  %v2768_v12 = vpop.f32.mrb[25].mxu1 }
0x25b8   : > { %v3035_v19 = vadd.f32 %v3034_v57, %v2768_v12  ;;  %v3332_v57 = vld [vmem:[%s5877_s6] sm:$0x1] }
0x25b9   : > { %v2773_v16 = vadd.f32 %v2772_v7, %v2771_v6 }
0x25bb   : > { %v2774_v18 = vsel %vm491_vm2, %v2773_v16, -inf }
0x25bc   : > { %2775 = vmax.xlane.f32.xlu0 %v2774_v18 }
0x25d2   : > { %3044 = vrot.lane.b32.xlu0 %v3035_v19, %s5898_s13 }
0x2649   : > { %v2776_v20 = vpop.xlane.xlu0 %2775 }
0x264a   : > { %v2777_v22 = vsub.f32 %v2773_v16, %v2776_v20 }
0x264c   : > { %v2778_v23 = vmul.f32 1.442695, %v2777_v22 }
0x264e   : > { %4759 = vpow2.f32 %v2778_v23 }
0x2658   : > { %v4760_v24 = vpop.eup %4759 }
0x2659   : > { %v2780_v25 = vsel %vm491_vm2, %v4760_v24, 0.0 }
0x265a   : > { %2781 = vadd.xlane.f32.xlu1 %v2780_v25 }
0x26e7   : > { %v2782_v26 = vpop.xlane.xlu1 %2781 }
0x26e8   : > { %4761 = vrcp.f32 %v2782_v26 }
0x26f2   : > { %v4762_v32 = vpop.eup %4761 }
0x26f3   : > { %v2784_v9 = vmul.f32 %v4762_v32, %v4760_v24 }
0x26f5   : > { %2785 = vst [vmem:[%s5004_s24 + $0x6] sm:$0x1] %v2784_v9  ;;  %4216 = vmatmul.mubr.f32.vlgmr.msra.gmra.mrb[26].mxu1 %v2784_v9 }
0x26f6   : > { %4639 = vmatpush3.bf16.msra.mxu1 %v5554_v59  ;;  %4283 = vmatprep.mubr.msk.f32.mxu1 %vm4878_vm3, %v4875_v8  ;;  %v2950_v59 = vrot.slane %v3608_v1, 1 }
0x26f7   : > { %4640 = vmatprep.subr.bf16.mxu1 %v4877_v27 }
0x26fa   : > { %4642 = vmatpush3.bf16.msra.mxu1 %v5560_v15  ;;  %v2953_v15 = vld [vmem:[%s5877_s6] sm:$0x1] }
0x26fb   : > { %4643 = vmatprep.subr.bf16.mxu1 %v4877_v27 }
0x27c8   : > { %v2868_v35 = vpop.f32.mrb[26].mxu1 }
0x27c9   : > { %v4217_v13 = vpop.f32.mrb[27].mxu1  ;;  %4227 = vmatmul.mubr.msk.f32.vlgmr.msra.gmra.mrb[24].mxu0 %vm413_vm1, %v2868_v35 }
0x27ca   : > { %4601 = vmatpush3.bf16.msra.mxu0 %v5581_v10  ;;  %4237 = vmatprep.mubr.msk.f32.mxu0 %vm4878_vm3, %v4875_v8 }
0x27cb   : > { %4602 = vmatprep.subr.bf16.mxu0 %v4877_v27 }
0x27ce   : > { %4604 = vmatpush3.bf16.msra.mxu0 %v5591_v37 }
0x27cf   : > { %4606 = vmatprep.subr.bf16.mxu0 %v5410_v4  ;;  %v2960_v4 = vld [vmem:[%s5879_s8] sm:$0x1] }
0x289c   : > { %v2945_v38 = vpop.f32.mrb[24].mxu0 }
0x289d   : > { %v2952_v41 = vadd.f32 %v2950_v59, %v2945_v38  ;;  %v4228_v21 = vpop.f32.mrb[25].mxu0 }
0x289f   : > { %v2954_v43 = vadd.f32 %v2953_v15, %v2952_v41 }
0x28a1   : > { %v2955_v44 = vmax.f32 %v2954_v43, 0.0 }
0x28a3   : > { %4238 = vmatmul.mubr.msk.f32.vlgmr.msra.gmra.mrb[26].mxu0 %vm413_vm1, %v2955_v44 }
0x28a4   : > { %4608 = vmatpush1.bf16.msra.mxu0 %v5421_v29  ;;  %3143 = vmatprep.mubr.f32.mxu0 %v4875_v8 }
0x28a5   : > { %4610 = vmatprep.subr.bf16.mxu0 %v5423_v31  ;;  %v3045_v31 = vpop.permute.xlu0 %3044 }
0x28a8   : > { %4612 = vmatpush1.bf16.msra.mxu0 %v5433_v34 }
0x28a9   : > { %4613 = vmatprep.subr.bf16.mxu0 %v4877_v27 }
0x2976   : > { %v3030_v28 = vpop.f32.mrb[26].mxu0 }
0x2977   : > { %v3031_v30 = vadd.f32 %v3030_v28, %v2960_v4  ;;  %v4239_v42 = vpop.f32.mrb[27].mxu0 }
0x2979   : > { %v3036_v33 = vadd.f32 %v3035_v19, %v3031_v30 }
0x297b   : > { %v3612_v36 = vmul.f32 -1.442695, %v3036_v33 }
0x297d   : > { %4763 = vpow2.f32 %v3612_v36 }
0x2987   : > { %v4764_v45 = vpop.eup %4763 }
0x2988   : > { %v3040_v29 = vadd.f32 1.0, %v4764_v45 }
0x298a   : > { %4765 = vrcp.f32 %v3040_v29 }
0x2994   : > { %v4766_v47 = vpop.eup %4765 }
0x2995   : > { %v3047_v50 = vmul.f32 %v4766_v47, %v3045_v31  ;;  %v3054_v14 = vsub.f32 1.0, %v4766_v47  ;;  %v3060_v54 = vmul.f32 %v4766_v47, %v5676_v2 }
0x2997   : > { %3049 = vrot.lane.b32.xlu1 %v3047_v50, %s5898_s13 }
0x2a09   : > { %v3050_v34 = vpop.permute.xlu1 %3049 }
0x2a0a   : > { %v3052_v46 = vadd.f32 %v3050_v34, %v3031_v30 }
0x2a0c   : > { %4767 = vtanh.f32 %v3052_v46 }
0x2a16   : > { %v4768_v49 = vpop.eup %4767 }
0x2a17   : > { %3056 = vrot.lane.b32.xlu0 %v4768_v49, %s5897_s19 }
0x2a89   : > { %v3057_v51 = vpop.permute.xlu0 %3056 }
0x2a8a   : > { %v3059_v56 = vmul.f32 %v3057_v51, %v3054_v14 }
0x2a8c   : > { %v5740_v58 = vadd.f32 %v3060_v54, %v3059_v56 }
0x2a8e   : > { %3063 = vrot.lane.b32.xlu1 %v5740_v58, %s5897_s19 }
0x2b00   : > { %v3064_v61 = vpop.permute.xlu1 %3063 }
0x2b01   : > { %3066 = vst.msk [vmem:[%s5002_s22 + $0x6] sm:$0x1] %vm791_vm4, %v3064_v61  ;;  %3614 = vmatmul.mubr.msk.f32.vlgmr.msra.gmra.mrb[28].mxu0 %vm413_vm1, %v3064_v61 }
0x2b02   : > { %4615 = vmatpush3.bf16.msra.mxu0 %v5473_v53  ;;  %4272 = vmatprep.mubr.msk.f32.mxu0 %vm4878_vm3, %v4875_v8  ;;  %v3613_v53 = vld [vmem:[%s5000_s16 + $0x7] ss:$8 sm:$0x3]  ;;  %s3453_s16 = scalar_lea.sflag [#allocation6], %s4992_s29 }
0x2b03   : > { %4616 = vmatprep.subr.bf16.mxu0 %v4877_v27  ;;  %v3329_v16 = vrot.slane %v3613_v53, 1 }
0x2b06   : > { %4618 = vmatpush3.bf16.msra.mxu0 %v5479_v48 }
0x2b07   : > { %4619 = vmatprep.subr.bf16.mxu0 %v4877_v27 }
0x2b0a   : > { %4621 = vmatpush3.bf16.msra.mxu0 %v5489_v52  ;;  %v3151_v52 = vld [vmem:[%s5875_s4] sm:$0x1] }
0x2b0b   : > { %4622 = vmatprep.subr.bf16.mxu0 %v4877_v27 }
0x2b0e   : > { %4624 = vmatpush3.bf16.msra.mxu0 %v5499_v55 }
0x2b0f   : > { %4625 = vmatprep.subr.bf16.mxu0 %v4877_v27 }
0x2b12   : > { %4627 = vmatpush3.bf16.msra.mxu0 %v5509_v60 }
0x2b13   : > { %4628 = vmatprep.subr.bf16.mxu0 %v4877_v27 }
0x2b16   : > { %4630 = vmatpush3.bf16.msra.mxu0 %v5521_v5  ;;  %v3413_v5 = vld [vmem:[%s5880_s9] sm:$0x1] }
0x2b17   : > { %4631 = vmatprep.subr.bf16.mxu0 %v4877_v27 }
0x2b1a   : > { %4633 = vmatpush3.bf16.msra.mxu0 %v5530_v11 }
0x2b1b   : > { %4634 = vmatprep.subr.bf16.mxu0 %v4877_v27 }
0x2b1e   : > { %4636 = vmatpush3.bf16.msra.mxu0 %v5540_v17 }
0x2bd4   : > { %v3145_v48 = vpop.f32.mrb[28].mxu0 }
0x2bd5   : > { %v3150_v55 = vadd.f32 %v3613_v53, %v3145_v48  ;;  %v3147_v60 = vpop.f32.mrb[29].mxu0 }
0x2bd6   : > { %v3414_v11 = vadd.f32 %v3413_v5, %v3147_v60 }
0x2bd7   : > { %v3152_v62 = vadd.f32 %v3151_v52, %v3150_v55 }
0x2bd9   : > { %v3153_v63 = vsel %vm491_vm2, %v3152_v62, -inf }
0x2bda   : > { %3154 = vmax.xlane.f32.xlu0 %v3153_v63 }
0x2bf0   : > { %3423 = vrot.lane.b32.xlu0 %v3414_v11, %s5898_s13 }
0x2c67   : > { %v3155_v17 = vpop.xlane.xlu0 %3154 }
0x2c68   : > { %v3156_v39 = vsub.f32 %v3152_v62, %v3155_v17 }
0x2c6a   : > { %v3157_v0 = vmul.f32 1.442695, %v3156_v39 }
0x2c6b   : > { %v3424_v35 = vpop.permute.xlu0 %3423 }
0x2c6c   : > { %4769 = vpow2.f32 %v3157_v0 }
0x2c76   : > { %v4770_v2 = vpop.eup %4769 }
0x2c77   : > { %v3159_v40 = vsel %vm491_vm2, %v4770_v2, 0.0 }
0x2c78   : > { %3160 = vadd.xlane.f32.xlu1 %v3159_v40 }
0x2d05   : > { %v3161_v1 = vpop.xlane.xlu1 %3160 }
0x2d06   : > { %4771 = vrcp.f32 %v3161_v1 }
0x2d10   : > { %v4772_v3 = vpop.eup %4771 }
0x2d11   : > { %v3163_v7 = vmul.f32 %v4772_v3, %v4770_v2 }
0x2d13   : > { %3164 = vst [vmem:[%s5004_s24 + $0x7] sm:$0x1] %v3163_v7  ;;  %4273 = vmatmul.mubr.f32.vlgmr.msra.gmra.mrb[30].mxu0 %v3163_v7 }
0x2de6   : > { %v3247_v6 = vpop.f32.mrb[30].mxu0 }
0x2de7   : > { %v4274_v12 = vpop.f32.mrb[31].mxu0  ;;  %4284 = vmatmul.mubr.msk.f32.vlgmr.msra.gmra.mrb[28].mxu1 %vm413_vm1, %v3247_v6 }
0x2de8   : > { %4645 = vmatpush3.bf16.msra.mxu1 %v5581_v10  ;;  %4294 = vmatprep.mubr.msk.f32.mxu1 %vm4878_vm3, %v4875_v8  ;;  %v3339_v8 = vld [vmem:[%s5879_s8] sm:$0x1] }
0x2de9   : > { %4646 = vmatprep.subr.bf16.mxu1 %v4877_v27 }
0x2dec   : > { %4648 = vmatpush3.bf16.msra.mxu1 %v5591_v37 }
0x2eba   : > { %v3324_v18 = vpop.f32.mrb[28].mxu1 }
0x2ebb   : > { %v3331_v19 = vadd.f32 %v3329_v16, %v3324_v18  ;;  %v4285_v20 = vpop.f32.mrb[29].mxu1 }
0x2ebd   : > { %v3333_v22 = vadd.f32 %v3332_v57, %v3331_v19 }
0x2ebf   : > { %v3334_v23 = vmax.f32 %v3333_v22, 0.0 }
0x2ec1   : > { %4295 = vmatmul.mubr.msk.f32.vlgmr.msra.gmra.mrb[30].mxu1 %vm413_vm1, %v3334_v23 }
0x2f94   : > { %v3409_v10 = vpop.f32.mrb[30].mxu1 }
0x2f95   : > { %v3410_v27 = vadd.f32 %v3409_v10, %v3339_v8  ;;  %v4296_v24 = vpop.f32.mrb[31].mxu1 }
0x2f97   : > { %v3415_v37 = vadd.f32 %v3414_v11, %v3410_v27 }
0x2f99   : > { %v3617_v25 = vmul.f32 -1.442695, %v3415_v37 }
0x2f9b   : > { %4773 = vpow2.f32 %v3617_v25 }
0x2fa5   : > { %v4774_v26 = vpop.eup %4773 }
0x2fa6   : > { %v3419_v32 = vadd.f32 1.0, %v4774_v26 }
0x2fa8   : > { %4775 = vrcp.f32 %v3419_v32 }
0x2fb2   : > { %v4776_v9 = vpop.eup %4775 }
0x2fb3   : > { %v3426_v13 = vmul.f32 %v4776_v9, %v3424_v35 }
0x2fb5   : > { %3428 = vrot.lane.b32.xlu1 %v3426_v13, %s5898_s13  ;;  %s4881_s13 = smov [#allocation5]  }
0x2fb6   : > { %s4783_s0 = sshll.u32 %s4881_s13, 4  ;;  %s4784_s0 = int_to_ptr.vmem [resolvable:$false] %s4783_s0 }
0x2fb7   : > { %s4785_s30 = scalar_lea.vmem %s4784_s0, 256  ;;  %p4786_p1 = scmp.lt.s32.totalorder %s3480_s12, %s4784_s0 }
0x2fb8   : > { %p4787_p2 = scmp.lt.s32.totalorder %s4785_s30, %s4779_s14 }
0x2fba   : > { %p4788_p3 = por %p4787_p2, %p4786_p1 }
0x2fbc   : > { %p4789_p4 = pnand %p4788_p3, %p4782_p0 }
0x3027   : > { %v3429_v59 = vpop.permute.xlu1 %3428 }
0x3028   : > { %v3431_v38 = vadd.f32 %v3429_v59, %v3410_v27 }
0x302a   : > { %4777 = vtanh.f32 %v3431_v38 }
0x3034   : > { %v4778_v15 = vpop.eup %4777 }
0x3035   : > { %3435 = vrot.lane.b32.xlu0 %v4778_v15, %s5897_s19 }
0x3036   : > { %4792 = shalt.err (!%p4789_p4)
}
0x3037   : > { %s4793_s24 = scalar_lea.hbm %s5796_s26, 128  ;;  %s4797_s13 = scalar_lea.hbm %s5882_s11, 256 }
0x3038   : > { %p4794_p7 = scmp.ne.s32.totalorder %s5796_s26, %s4793_s24  ;;  %p4798_p10 = scmp.lt.u32.totalorder %s5796_s26, %s5882_s11 }
0x3039   : > { %p4799_p11 = scmp.lt.u32.totalorder %s4797_s13, %s4793_s24  ;;  %p4801_p13 = scmp.lt.u32.totalorder %s4793_s24, %s5796_s26 }
0x303a   : > { %p4795_p8 = pnand %p4794_p7, %p4981_p5 }
0x303b   : > { %p4800_p12 = por %p4799_p11, %p4798_p10 }
0x303c   : > { %p4796_p9 = pneg %p4795_p8 }
0x303d   : > { %p4802_p0 = por %p4801_p13, %p4800_p12 }
0x303f   : > { %p4803_p1 = pnand %p4802_p0, %p4796_p9 }
0x3041   : > { %4806 = shalt.err (!%p4803_p1)
}
0x3042   : > { %4650 = dma.vmem_to_hbm [thread:$0]  (%p4981_p5), %s3480_s12, 128, %s5796_s26, %s3453_s16   ;;  %v3433_v41 = vsub.f32 1.0, %v4776_v9  ;;  %v3439_v43 = vmul.f32 %v4776_v9, %v5740_v58 }
0x3043   : > { %s3466_s1 = sshll.u32 %s5002_s22, 4  ;;  %s5899_s14 = sshll.u32 %s4964_s21, 7  ;;  %s5827_s1 = int_to_ptr.vmem [resolvable:$true] %s3466_s1 }
0x3044   : > { %s5825_s25 = scalar_lea.hbm %s5881_s10, %s5899_s14  ;;  %s3448_s26 = scalar_lea.sflag [#allocation4], %s4992_s29 }
0x3045   : > { %s4807_s12 = scalar_lea.vmem %s5827_s1, 128  ;;  %s4882_s21 = smov [#allocation3]  }
0x3046   : > { %p4808_p2 = scmp.ne.s32.totalorder %s5827_s1, %s4807_s12 }
0x3048   : > { %p4809_p3 = pnand %p4808_p2, %p4981_p5 }
0x304a   : > { %p4810_p4 = pneg %p4809_p3 }
0x30a7   : > { %v3436_v21 = vpop.permute.xlu0 %3435 }
0x30a8   : > { %v3438_v44 = vmul.f32 %v3436_v21, %v3433_v41 }
0x30aa   : > { %v3440_v4 = vadd.f32 %v3439_v43, %v3438_v44 }
0x30ac   : > { %3442 = vrot.lane.b32.xlu1 %v3440_v4, %s5897_s19  ;;  %s4811_s19 = sshll.u32 %s4882_s21, 4  ;;  %s4812_s19 = int_to_ptr.vmem [resolvable:$false] %s4811_s19 }
0x30ad   : > { %s4813_s16 = scalar_lea.vmem %s4812_s19, 256  ;;  %p4814_p7 = scmp.lt.s32.totalorder %s5827_s1, %s4812_s19 }
0x30ae   : > { %p4815_p8 = scmp.lt.s32.totalorder %s4813_s16, %s4807_s12 }
0x30b0   : > { %p4816_p9 = por %p4815_p8, %p4814_p7 }
0x30b2   : > { %p4817_p10 = pnand %p4816_p9, %p4810_p4 }
0x311e   : > { %v3443_v28 = vpop.permute.xlu1 %3442 }
0x311f   : > { %3445 = vst.msk [vmem:[%s5002_s22 + $0x7] sm:$0x1] %vm791_vm4, %v3443_v28  ;;  %3446 = vst.msk [vmem:[#allocation2] sm:$0x1] %vm791_vm4, %v3443_v28 }
0x3120   : > { %4820 = shalt.err (!%p4817_p10)
}
0x3121   : > { %s4821_s29 = scalar_lea.hbm %s5825_s25, 128  ;;  %s4825_s13 = scalar_lea.hbm %s5881_s10, 256 }
0x3122   : > { %p4822_p11 = scmp.ne.s32.totalorder %s5825_s25, %s4821_s29  ;;  %p4826_p0 = scmp.lt.u32.totalorder %s5825_s25, %s5881_s10 }
0x3123   : > { %p4827_p1 = scmp.lt.u32.totalorder %s4825_s13, %s4821_s29  ;;  %p4829_p3 = scmp.lt.u32.totalorder %s4821_s29, %s5825_s25 }
0x3124   : > { %p4823_p12 = pnand %p4822_p11, %p4981_p5 }
0x3125   : > { %p4828_p2 = por %p4827_p1, %p4826_p0 }
0x3126   : > { %p4824_p13 = pneg %p4823_p12 }
0x3127   : > { %p4830_p4 = por %p4829_p3, %p4828_p2 }
0x3129   : > { %p4831_p7 = pnand %p4830_p4, %p4824_p13 }
0x312b   : > { %4834 = shalt.err (!%p4831_p7)
}
0x312c   : > { %4649 = dma.vmem_to_hbm [thread:$0]  (%p4981_p5), %s5827_s1, 128, %s5825_s25, %s3448_s26  }
0x312d PF: > { %p4660_p8 = scmp.ge.s32.totalorder %s4873_s20, 2  ;;  %s3491_s30 = sand.u32 1, %s4861_s17  }
0x312e   : > { %s3492_s24 = scalar_lea.sflag [#allocation4], %s3491_s30 }
0x312f   : > { %p4654_p9 = pnand %p4660_p8, %p4985_p6 }
0x3131   : > { %4852 = dma.done.wait (!%p4654_p9), %s3492_s24, 128  }
0x3132   : > { %4854 = vsyncadd (!%p4654_p9), %s3492_s24, 4294967168  ;;  %s3501_s12 = scalar_lea.sflag [#allocation6], %s3491_s30 }
0x3133   : > { %4856 = dma.done.wait (!%p4654_p9), %s3501_s12, 128  }
0x3134   : > { %4858 = vsyncadd (!%p4654_p9), %s3501_s12, 4294967168  ;;  %s5900_s27 = sld [smem:[#allocation9_spill]]  ;;  %s5901_s19 = sld [smem:[#allocation10_spill]] }
0x3135   : > { %p25_p5 = scmp.ge.s32.totalorder %s4968_s23, 4   ;;  %s5902_s17 = smov %s4865_s18 }
0x3136   : > { %s5904_s20 = smov %s4968_s23 }
0x3137   :  { %27 = sbr.rel (!%p25_p5) target bundleno = 8 (0x8), region = 123 }
0x313a   : > { %s5903_s18 = smov %s5900_s27 }
0x313e   :  { %3506 = vsyncpa [#allocation4], 1 }
0x313f   :  { %3508 = vsyncpa [#allocation4 + $0x1], 1 }
0x3140   :  { %3509 = vsyncpa [#allocation6], 1 }
0x3141   :  { %3511 = vsyncpa [#allocation6 + $0x1], 1 }

</bundles_post_ra>
